<compile_context>
chip_gen: v7x
topology: tpu7x:2x2x1
jax: 0.10.0
libtpu: 0.0.40
codegen_flags: <defaults>
</compile_context>

<pallas_src>
import numpy as np
import jax
import jax.numpy as jnp
from jax import lax
from jax.experimental import pallas as pl
from jax.experimental.pallas import tpu as pltpu

# ---- model hyper-parameters (match OwnRefTransformerSkipActor defaults,
# ---- except hidden_dim shrunk to 32 for a small example) ----
IN_DIM = 8
OUT_DIM = 2
NUM_HEADS = 3
K_FEAT = 5                         # per-head feature size (fixed at 5 in the module)
HK = NUM_HEADS * K_FEAT            # 15
HIDDEN = 32
F0 = HK + IN_DIM                   # 23  (attention output ++ state)
F1 = HIDDEN + F0                   # 55  (hidden ++ skip)
F_ACC = 2 * HIDDEN + 2 * OUT_DIM   # 68  (acc0 | acc1 | fused mu,log_std head)
F_S = HK + F_ACC                   # 83  (folded q.k coeffs | state-part accumulators)
LOG_STD_MIN = -20.0
LOG_STD_MAX = 2.0
NEG_INF = -1e30

# packed weight-slab row offsets (8-aligned) and slab shape
_R_WS, _R_BS, _R_WATT, _R_W1H, _R_WHH = 0, 8, 16, 32, 64
SLAB_ROWS, SLAB_COLS = 96, 128

B = 2                              # batch
T = 8                              # n_agents


# ----------------------------------------------------------------------------
# Pallas kernel: one batch tile (bt batch elements = bt*t agent rows) per step.
# ----------------------------------------------------------------------------
def actor_kernel(state_ref, eps_ref, w_ref, out_ref):
    bt, t, _ = state_ref.shape
    rows = bt * t

    state = state_ref[...]                                  # (bt, t, 8)
    S = state.reshape(rows, IN_DIM)                         # (rows, 8)
    eps = eps_ref[...].reshape(rows, OUT_DIM)               # (rows, 2)

    # ---- packed weights: static slices of the single slab (free) ----
    wS = w_ref[_R_WS:_R_WS + IN_DIM, 0:F_S]                 # (8, 83)
    bS = w_ref[_R_BS:_R_BS + 1, 0:F_S]                      # (1, 83)
    watt = w_ref[_R_WATT:_R_WATT + HK, 0:F_ACC]             # (15, 68)
    w1h = w_ref[_R_W1H:_R_W1H + HIDDEN, 0:HIDDEN]           # (32, 32)
    whh = w_ref[_R_WHH:_R_WHH + HIDDEN, 0:2 * OUT_DIM]      # (32, 4)

    # ---- one fused state projection: [folded q.k coeffs | state-part MLP] ----
    sfull = jnp.dot(S, wS, preferred_element_type=jnp.float32) + bS      # (rows, 83)
    qk4 = sfull[:, 0:HK].reshape(bt, t, NUM_HEADS, K_FEAT)               # (bt,t,3,5)
    acc_s = sfull[:, HK:F_S]                                             # (rows, 68)

    # ---- geometry: pairwise axis j kept on lanes ----
    x, y = state[..., 0], state[..., 1]                     # (bt, t)
    vx, vy = state[..., 2], state[..., 3]
    ang = 0.5 * np.pi - state[..., 7]                       # per-agent angle (bt, t)
    c = jnp.cos(ang)                                        # trig once per agent
    s = jnp.sin(ang)
    cj = c[:, None, :]                                      # angle of neighbour j
    sj = s[:, None, :]

    dx = x[:, None, :] - x[:, :, None]                      # (bt,t,t): [b,i,j]=x_j-x_i
    dy = y[:, None, :] - y[:, :, None]
    dvx = vx[:, None, :] - vx[:, :, None]
    dvy = vy[:, None, :] - vy[:, :, None]

    dxp = dx * cj - dy * sj
    dyp = dx * sj + dy * cj
    dvxp = dvx * cj - dvy * sj
    dvyp = dvx * sj + dvy * cj

    # diagonal (self-pair) mask: one (t, t) constant, broadcast at use
    ii = lax.broadcasted_iota(jnp.int32, (t, t), 0)
    jj = lax.broadcasted_iota(jnp.int32, (t, t), 1)
    diag = ii == jj
    mask_bias = jnp.where(diag, NEG_INF, 0.0)               # (t, t)

    r2 = dxp * dxp + dyp * dyp
    r2s = jnp.where(diag[None, :, :], 1.0, r2)              # guard r=0 on masked diag
    inv_r = lax.rsqrt(r2s)                                  # EUP
    r = r2s * inv_r
    r_trans = 1.0 / (1.0 + jnp.exp(5.0 * (r - 0.2) - 1.0))
    feats = (dxp * inv_r, dyp * inv_r, dvxp, dvyp, r_trans)  # 5 x (bt, t, t)

    # ---- attention: all heads in one softmax chain, softmax over j (lanes) ----
    # logits[b,i,h,j] = sum_c qk[b,i,h,c] * feats[c][b,i,j]   (+ diag mask)
    logits = (mask_bias[None, :, None, :]
              + qk4[:, :, :, 0:1] * feats[0][:, :, None, :])
    for cidx in range(1, K_FEAT):
        logits = logits + qk4[:, :, :, cidx:cidx + 1] * feats[cidx][:, :, None, :]
    m = jnp.max(logits, axis=-1, keepdims=True)
    e = jnp.exp(logits - m)
    att = e / jnp.sum(e, axis=-1, keepdims=True)            # exact recip (logp fidelity)
    # TODO(synk): if t == 1 ever occurs, all logits are masked and att is NaN
    # (the reference softmax over t-1 = 0 neighbours is equally degenerate).

    # attention-weighted raw geometry features; value projection folded into watt
    g = jnp.stack([jnp.sum(att * f[:, :, None, :], axis=-1) for f in feats], axis=-1)
    G = g.reshape(rows, HK)                                 # (rows, 15), columns (h, c)

    # ---- skip-MLP + fused mu/log_std head (weights pre-split/fused in wrapper) ----
    base = acc_s + jnp.dot(G, watt, preferred_element_type=jnp.float32)  # (rows, 68)
    h1 = jnp.maximum(base[:, 0:HIDDEN], 0.0)
    h2 = jnp.maximum(base[:, HIDDEN:2 * HIDDEN]
                     + jnp.dot(h1, w1h, preferred_element_type=jnp.float32), 0.0)
    heads = jnp.tanh(base[:, 2 * HIDDEN:F_ACC]
                     + jnp.dot(h2, whh, preferred_element_type=jnp.float32))   # (rows,4)

    mu = heads[:, 0:OUT_DIM]
    log_std = LOG_STD_MIN + 0.5 * (LOG_STD_MAX - LOG_STD_MIN) * (heads[:, OUT_DIM:2 * OUT_DIM] + 1.0)
    std = jnp.exp(log_std)
    z = mu + std * eps                                      # Normal(mu, std).rsample()
    action = jnp.tanh(z)
    logp_el = (-0.5 * eps * eps - log_std - 0.5 * np.log(2.0 * np.pi)
               - jnp.log(1.0 - action * action + 1e-7))
    logp = jnp.sum(logp_el, axis=-1, keepdims=True)         # (rows, 1)

    # single fused 2-D store: [action(2) | logp(1)]
    # (for production batch sizes a transposed (3, rows>=128) layout would be
    #  fully lane-dense; at these sizes the 3-wide store is negligible)
    out_ref[...] = jnp.concatenate([action, logp], axis=-1)  # (rows, 3)


# ----------------------------------------------------------------------------
# Wrapper.
# ----------------------------------------------------------------------------
def _pick_batch_tile(b, t, max_rows=256):
    """Largest divisor of b with bt*t <= max_rows; prefer >=2 grid steps
    (v7x megacore) and keep the flattened output block sublane-aligned."""
    best = None
    for bt in range(b, 0, -1):
        if b % bt:
            continue
        nb = b // bt
        if bt * t > max_rows and bt > 1:
            continue
        if nb > 1 and (bt * t) % 8 != 0:
            continue
        if best is None:
            best = bt
        if nb >= 2:
            return bt
    return best if best is not None else b


@jax.jit
def actor_forward(state, eps, params):
    b, t, _ = state.shape
    bt = _pick_batch_tile(b, t)
    nb = b // bt

    # ---- weight folding / packing (zero kernel cost) ----
    wq, wk, wv = params["wq"], params["wk"], params["wv"]            # (8,15),(5,15),(5,15)
    w0, b0 = params["w0"], params["b0"]                              # (23,32),(1,32)
    w1, b1 = params["w1"], params["b1"]                              # (55,32),(1,32)
    wh = jnp.concatenate([params["wmu"], params["wls"]], axis=1)     # (55, 4)
    bh = jnp.concatenate([params["bmu"], params["bls"]], axis=1)     # (1, 4)

    # fold toqueries . tokeys (and the 1/sqrt(5) scale) into one state matrix
    wq_r = wq.reshape(IN_DIM, NUM_HEADS, K_FEAT)
    wk_r = wk.reshape(K_FEAT, NUM_HEADS, K_FEAT)
    wqk = (jnp.einsum("dhk,chk->dhc", wq_r, wk_r)
           / np.sqrt(float(K_FEAT))).reshape(IN_DIM, HK)             # (8, 15)

    # block-diagonal value projection folded into the attention-part MLP weights
    wv_bd = jnp.einsum("hg,chk->hcgk",
                       jnp.eye(NUM_HEADS, dtype=jnp.float32),
                       wv.reshape(K_FEAT, NUM_HEADS, K_FEAT)).reshape(HK, HK)
    w_att_cat = jnp.concatenate(
        [w0[:HK], w1[HIDDEN:HIDDEN + HK], wh[HIDDEN:HIDDEN + HK]], axis=1)   # (15, 68)
    watt = wv_bd @ w_att_cat                                                  # (15, 68)

    ws_all = jnp.concatenate([w0[HK:], w1[HIDDEN + HK:], wh[HIDDEN + HK:]], axis=1)  # (8, 68)
    b_all = jnp.concatenate([b0, b1, bh], axis=1)                                    # (1, 68)
    wS = jnp.concatenate([wqk, ws_all], axis=1)                                      # (8, 83)
    bS = jnp.concatenate([jnp.zeros((1, HK), jnp.float32), b_all], axis=1)           # (1, 83)

    # pack everything into ONE lane-padded slab (single DMA stream per grid step)
    slab = jnp.zeros((SLAB_ROWS, SLAB_COLS), jnp.float32)
    slab = slab.at[_R_WS:_R_WS + IN_DIM, 0:F_S].set(wS)
    slab = slab.at[_R_BS:_R_BS + 1, 0:F_S].set(bS)
    slab = slab.at[_R_WATT:_R_WATT + HK, 0:F_ACC].set(watt)
    slab = slab.at[_R_W1H:_R_W1H + HIDDEN, 0:HIDDEN].set(w1[:HIDDEN])
    slab = slab.at[_R_WHH:_R_WHH + HIDDEN, 0:2 * OUT_DIM].set(wh[:HIDDEN])

    out = pl.pallas_call(
        actor_kernel,
        grid=(nb,),
        in_specs=[
            pl.BlockSpec((bt, t, IN_DIM), lambda i: (i, 0, 0)),
            pl.BlockSpec((bt, t, OUT_DIM), lambda i: (i, 0, 0)),
            pl.BlockSpec((SLAB_ROWS, SLAB_COLS), lambda i: (0, 0)),
        ],
        out_specs=pl.BlockSpec((bt * t, OUT_DIM + 1), lambda i: (i, 0)),
        out_shape=jax.ShapeDtypeStruct((b * t, OUT_DIM + 1), jnp.float32),
        compiler_params=pltpu.CompilerParams(dimension_semantics=("parallel",)),
    )(state, eps, slab)

    action = out[:, 0:OUT_DIM].reshape(b, t, OUT_DIM)
    logp = out[:, OUT_DIM:OUT_DIM + 1].reshape(b, t, 1)
    return action, logp


# ----------------------------------------------------------------------------
# Deterministic parameter construction (shapes follow the module __init__;
# heads are stored fused along the output axis, i.e. column h*K+k == (head h, feat k)).
# ----------------------------------------------------------------------------
def build_params(key):
    ks = jax.random.split(key, 11)

    def uni(k, shape, bound):
        return jax.random.uniform(k, shape, jnp.float32, -bound, bound)

    p = {}
    p["wq"] = uni(ks[0], (IN_DIM, HK), 1.0 / np.sqrt(IN_DIM))     # toqueries (no bias)
    p["wk"] = uni(ks[1], (K_FEAT, HK), 1.0 / np.sqrt(K_FEAT))     # tokeys    (no bias)
    p["wv"] = uni(ks[2], (K_FEAT, HK), 1.0 / np.sqrt(K_FEAT))     # tovalues  (no bias)
    p["w0"] = uni(ks[3], (F0, HIDDEN), 1.0 / np.sqrt(F0))
    p["b0"] = uni(ks[4], (1, HIDDEN), 1.0 / np.sqrt(F0))
    p["w1"] = uni(ks[5], (F1, HIDDEN), 1.0 / np.sqrt(F1))
    p["b1"] = uni(ks[6], (1, HIDDEN), 1.0 / np.sqrt(F1))
    p["wmu"] = uni(ks[7], (F1, OUT_DIM), 0.003)                   # init_layer_uniform
    p["bmu"] = uni(ks[8], (1, OUT_DIM), 0.003)
    p["wls"] = uni(ks[9], (F1, OUT_DIM), 0.003)
    p["bls"] = uni(ks[10], (1, OUT_DIM), 0.003)
    return p


# ----------------------------------------------------------------------------
# Pure-JAX reference (independent path: explicit diagonal removal via gather,
# softmax over t-1 neighbours), mirrors the PyTorch module exactly.
# ----------------------------------------------------------------------------
def geometry_glue(state):
    b, t, _ = state.shape
    s4 = state[:, :, 0:4]
    diff = s4[:, None, :, :] - s4[:, :, None, :]              # [b,i,j] = s4[b,j]-s4[b,i]
    ang = -state[:, :, -1] + 0.5 * np.pi                       # (b, t)
    j_idx = np.array([[j for j in range(t) if j != i] for i in range(t)], dtype=np.int32)
    i_idx = np.arange(t, dtype=np.int32)[:, None]
    rel_raw = diff[:, i_idx, j_idx, :]                         # (b, t, t-1, 4)
    ang_g = ang[:, j_idx][..., None]                           # (b, t, t-1, 1)
    return rel_raw, ang_g


def reference_forward(state, eps, p):
    rel_raw, ang_g = geometry_glue(state)
    c, s = jnp.cos(ang_g), jnp.sin(ang_g)
    dx, dy, dvx, dvy = (rel_raw[..., 0:1], rel_raw[..., 1:2],
                        rel_raw[..., 2:3], rel_raw[..., 3:4])
    dxp = dx * c - dy * s
    dyp = dx * s + dy * c
    dvxp = dvx * c - dvy * s
    dvyp = dvx * s + dvy * c
    r = jnp.sqrt(dxp ** 2 + dyp ** 2)
    r_trans = 1.0 / (1.0 + jnp.exp(-1.0 + 5.0 * (r - 0.2)))
    rel5 = jnp.concatenate([dxp / r, dyp / r, dvxp, dvyp, r_trans], axis=-1)

    b_, t_ = state.shape[0], state.shape[1]
    q = (state @ p["wq"]).reshape(b_, t_, NUM_HEADS, K_FEAT)
    k = (rel5 @ p["wk"]).reshape(b_, t_, t_ - 1, NUM_HEADS, K_FEAT)
    v = (rel5 @ p["wv"]).reshape(b_, t_, t_ - 1, NUM_HEADS, K_FEAT)
    wp = jnp.sum(k * q[:, :, None, :, :], axis=-1) / np.sqrt(float(K_FEAT))
    att = jax.nn.softmax(wp, axis=2)
    x_att = jnp.sum(att[..., None] * v, axis=2).reshape(b_, t_, HK)
    x_cat = jnp.concatenate([x_att, state], axis=-1)
    h1 = jax.nn.relu(x_cat @ p["w0"] + p["b0"])
    x1 = jnp.concatenate([h1, x_cat], axis=-1)
    h2 = jax.nn.relu(x1 @ p["w1"] + p["b1"])
    x2 = jnp.concatenate([h2, x_cat], axis=-1)
    mu = jnp.tanh(x2 @ p["wmu"] + p["bmu"])
    log_std = jnp.tanh(x2 @ p["wls"] + p["bls"])
    log_std = LOG_STD_MIN + 0.5 * (LOG_STD_MAX - LOG_STD_MIN) * (log_std + 1.0)
    std = jnp.exp(log_std)
    z = mu + std * eps
    action = jnp.tanh(z)
    logp = (-0.5 * eps ** 2 - log_std - 0.5 * np.log(2.0 * np.pi)
            - jnp.log(1.0 - action ** 2 + 1e-7))
    return action, jnp.sum(logp, axis=-1, keepdims=True)


if __name__ == "__main__":
    key = jax.random.PRNGKey(0)
    k_state, k_eps, k_param = jax.random.split(key, 3)

    state = jax.random.uniform(k_state, (B, T, IN_DIM), jnp.float32, -1.0, 1.0)
    eps = jax.random.normal(k_eps, (B, T, OUT_DIM), jnp.float32)
    params = build_params(k_param)

    action, logp = actor_forward(state, eps, params)
    action, logp = jax.block_until_ready((action, logp))

    ref_action, ref_logp = reference_forward(state, eps, params)
    assert action.shape == (B, T, OUT_DIM) and logp.shape == (B, T, 1)
    err_a = float(np.abs(np.asarray(action) - np.asarray(ref_action)).max())
    err_l = float(np.abs(np.asarray(logp) - np.asarray(ref_logp)).max())
    assert np.allclose(np.asarray(action), np.asarray(ref_action), atol=5e-3, rtol=5e-3), err_a
    assert np.allclose(np.asarray(logp), np.asarray(ref_logp), atol=5e-3, rtol=5e-3), err_l

    print("KERNEL_OK")
</pallas_src>

<mosaic_0001>
module attributes {stable_mosaic.version = 11 : i64} {
  func.func @actor_kernel(%arg0: i32, %arg1: memref<1x8x8xf32, #tpu.memory_space<vmem>>, %arg2: memref<1x8x2xf32, #tpu.memory_space<vmem>>, %arg3: memref<96x128xf32, #tpu.memory_space<vmem>>, %arg4: memref<8x3xf32, #tpu.memory_space<vmem>>) attributes {dimension_semantics = [#tpu.dimension_semantics<parallel>], iteration_bounds = array<i64: 2>, scalar_prefetch = 0 : i64, scratch_operands = 0 : i64, tpu.core_type = #tpu.core_type<tc>, window_params = [{transform_indices = @transform_0, window_bounds = array<i64: 1, 8, 8>}, {transform_indices = @transform_1, window_bounds = array<i64: 1, 8, 2>}, {pipeline_mode = #tpu.pipeline_mode<synchronous>, transform_indices = @transform_2, window_bounds = array<i64: 96, 128>}, {transform_indices = @transform_3, window_bounds = array<i64: 8, 3>}]} {
    %c0 = arith.constant 0 : index
    %c0_0 = arith.constant 0 : index
    %c0_1 = arith.constant 0 : index
    %0 = vector.load %arg1[%c0, %c0_0, %c0_1] : memref<1x8x8xf32, #tpu.memory_space<vmem>>, vector<1x8x8xf32>
    %1 = vector.shape_cast %0 : vector<1x8x8xf32> to vector<8x8xf32>
    %c0_2 = arith.constant 0 : index
    %c0_3 = arith.constant 0 : index
    %c0_4 = arith.constant 0 : index
    %2 = vector.load %arg2[%c0_2, %c0_3, %c0_4] : memref<1x8x2xf32, #tpu.memory_space<vmem>>, vector<1x8x2xf32>
    %3 = vector.shape_cast %2 : vector<1x8x2xf32> to vector<8x2xf32>
    %c0_5 = arith.constant 0 : index
    %c0_6 = arith.constant 0 : index
    %4 = vector.load %arg3[%c0_5, %c0_6] : memref<96x128xf32, #tpu.memory_space<vmem>>, vector<8x83xf32>
    %c8 = arith.constant 8 : index
    %c0_7 = arith.constant 0 : index
    %5 = vector.load %arg3[%c8, %c0_7] : memref<96x128xf32, #tpu.memory_space<vmem>>, vector<1x83xf32>
    %c16 = arith.constant 16 : index
    %c0_8 = arith.constant 0 : index
    %6 = vector.load %arg3[%c16, %c0_8] : memref<96x128xf32, #tpu.memory_space<vmem>>, vector<15x68xf32>
    %c32 = arith.constant 32 : index
    %c0_9 = arith.constant 0 : index
    %7 = vector.load %arg3[%c32, %c0_9] : memref<96x128xf32, #tpu.memory_space<vmem>>, vector<32x32xf32>
    %c64 = arith.constant 64 : index
    %c0_10 = arith.constant 0 : index
    %8 = vector.load %arg3[%c64, %c0_10] : memref<96x128xf32, #tpu.memory_space<vmem>>, vector<32x4xf32>
    %cst = arith.constant dense<0.000000e+00> : vector<8x83xf32>
    %9 = tpu.matmul %1, %4, %cst {dimension_numbers = #tpu.dot_dimension_numbers<[1], [0], [0], [1], [0, 0, 1, 1], [], []>} : vector<8x8xf32>, vector<8x83xf32>, vector<8x83xf32> -> vector<8x83xf32>
    %10 = vector.broadcast %5 : vector<1x83xf32> to vector<8x83xf32>
    %11 = arith.addf %9, %10 : vector<8x83xf32>
    %12 = vector.extract_strided_slice %11 {offsets = [0, 0], sizes = [8, 15], strides = [1, 1]} : vector<8x83xf32> to vector<8x15xf32>
    %13 = vector.shape_cast %12 : vector<8x15xf32> to vector<1x8x3x5xf32>
    %14 = vector.extract_strided_slice %11 {offsets = [0, 15], sizes = [8, 68], strides = [1, 1]} : vector<8x83xf32> to vector<8x68xf32>
    %15 = vector.extract_strided_slice %0 {offsets = [0, 0, 0], sizes = [1, 8, 1], strides = [1, 1, 1]} : vector<1x8x8xf32> to vector<1x8x1xf32>
    %16 = vector.shape_cast %15 : vector<1x8x1xf32> to vector<1x8xf32>
    %17 = vector.extract_strided_slice %0 {offsets = [0, 0, 1], sizes = [1, 8, 1], strides = [1, 1, 1]} : vector<1x8x8xf32> to vector<1x8x1xf32>
    %18 = vector.shape_cast %17 : vector<1x8x1xf32> to vector<1x8xf32>
    %19 = vector.extract_strided_slice %0 {offsets = [0, 0, 2], sizes = [1, 8, 1], strides = [1, 1, 1]} : vector<1x8x8xf32> to vector<1x8x1xf32>
    %20 = vector.shape_cast %19 : vector<1x8x1xf32> to vector<1x8xf32>
    %21 = vector.extract_strided_slice %0 {offsets = [0, 0, 3], sizes = [1, 8, 1], strides = [1, 1, 1]} : vector<1x8x8xf32> to vector<1x8x1xf32>
    %22 = vector.shape_cast %21 : vector<1x8x1xf32> to vector<1x8xf32>
    %23 = vector.extract_strided_slice %0 {offsets = [0, 0, 7], sizes = [1, 8, 1], strides = [1, 1, 1]} : vector<1x8x8xf32> to vector<1x8x1xf32>
    %24 = vector.shape_cast %23 : vector<1x8x1xf32> to vector<1x8xf32>
    %cst_11 = arith.constant 1.57079637 : f32
    %25 = vector.broadcast %cst_11 : f32 to vector<1x8xf32>
    %26 = arith.subf %25, %24 : vector<1x8xf32>
    %27 = math.cos %26 : vector<1x8xf32>
    %28 = math.sin %26 : vector<1x8xf32>
    %29 = vector.shape_cast %27 : vector<1x8xf32> to vector<1x1x8xf32>
    %30 = vector.shape_cast %28 : vector<1x8xf32> to vector<1x1x8xf32>
    %31 = vector.shape_cast %16 : vector<1x8xf32> to vector<1x1x8xf32>
    %32 = vector.shape_cast %16 : vector<1x8xf32> to vector<1x8x1xf32>
    %33 = vector.broadcast %31 : vector<1x1x8xf32> to vector<1x8x8xf32>
    %34 = vector.broadcast %32 : vector<1x8x1xf32> to vector<1x8x8xf32>
    %35 = arith.subf %33, %34 : vector<1x8x8xf32>
    %36 = vector.shape_cast %18 : vector<1x8xf32> to vector<1x1x8xf32>
    %37 = vector.shape_cast %18 : vector<1x8xf32> to vector<1x8x1xf32>
    %38 = vector.broadcast %36 : vector<1x1x8xf32> to vector<1x8x8xf32>
    %39 = vector.broadcast %37 : vector<1x8x1xf32> to vector<1x8x8xf32>
    %40 = arith.subf %38, %39 : vector<1x8x8xf32>
    %41 = vector.shape_cast %20 : vector<1x8xf32> to vector<1x1x8xf32>
    %42 = vector.shape_cast %20 : vector<1x8xf32> to vector<1x8x1xf32>
    %43 = vector.broadcast %41 : vector<1x1x8xf32> to vector<1x8x8xf32>
    %44 = vector.broadcast %42 : vector<1x8x1xf32> to vector<1x8x8xf32>
    %45 = arith.subf %43, %44 : vector<1x8x8xf32>
    %46 = vector.shape_cast %22 : vector<1x8xf32> to vector<1x1x8xf32>
    %47 = vector.shape_cast %22 : vector<1x8xf32> to vector<1x8x1xf32>
    %48 = vector.broadcast %46 : vector<1x1x8xf32> to vector<1x8x8xf32>
    %49 = vector.broadcast %47 : vector<1x8x1xf32> to vector<1x8x8xf32>
    %50 = arith.subf %48, %49 : vector<1x8x8xf32>
    %51 = vector.broadcast %29 : vector<1x1x8xf32> to vector<1x8x8xf32>
    %52 = arith.mulf %35, %51 : vector<1x8x8xf32>
    %53 = vector.broadcast %30 : vector<1x1x8xf32> to vector<1x8x8xf32>
    %54 = arith.mulf %40, %53 : vector<1x8x8xf32>
    %55 = arith.subf %52, %54 : vector<1x8x8xf32>
    %56 = vector.broadcast %30 : vector<1x1x8xf32> to vector<1x8x8xf32>
    %57 = arith.mulf %35, %56 : vector<1x8x8xf32>
    %58 = vector.broadcast %29 : vector<1x1x8xf32> to vector<1x8x8xf32>
    %59 = arith.mulf %40, %58 : vector<1x8x8xf32>
    %60 = arith.addf %57, %59 : vector<1x8x8xf32>
    %61 = vector.broadcast %29 : vector<1x1x8xf32> to vector<1x8x8xf32>
    %62 = arith.mulf %45, %61 : vector<1x8x8xf32>
    %63 = vector.broadcast %30 : vector<1x1x8xf32> to vector<1x8x8xf32>
    %64 = arith.mulf %50, %63 : vector<1x8x8xf32>
    %65 = arith.subf %62, %64 : vector<1x8x8xf32>
    %66 = vector.broadcast %30 : vector<1x1x8xf32> to vector<1x8x8xf32>
    %67 = arith.mulf %45, %66 : vector<1x8x8xf32>
    %68 = vector.broadcast %29 : vector<1x1x8xf32> to vector<1x8x8xf32>
    %69 = arith.mulf %50, %68 : vector<1x8x8xf32>
    %70 = arith.addf %67, %69 : vector<1x8x8xf32>
    %71 = tpu.iota {dimensions = array<i32: 0>} : vector<8x8xi32>
    %72 = tpu.iota {dimensions = array<i32: 1>} : vector<8x8xi32>
    %73 = arith.cmpi eq, %71, %72 : vector<8x8xi32>
    %cst_12 = arith.constant -1.000000e+30 : f32
    %cst_13 = arith.constant 0.000000e+00 : f32
    %74 = vector.broadcast %cst_12 : f32 to vector<8x8xf32>
    %75 = vector.broadcast %cst_13 : f32 to vector<8x8xf32>
    %76 = arith.select %73, %74, %75 : vector<8x8xi1>, vector<8x8xf32>
    %77 = arith.mulf %55, %55 : vector<1x8x8xf32>
    %78 = arith.mulf %60, %60 : vector<1x8x8xf32>
    %79 = arith.addf %77, %78 : vector<1x8x8xf32>
    %80 = vector.shape_cast %73 : vector<8x8xi1> to vector<1x8x8xi1>
    %cst_14 = arith.constant 1.000000e+00 : f32
    %81 = vector.broadcast %cst_14 : f32 to vector<1x8x8xf32>
    %82 = arith.select %80, %81, %79 : vector<1x8x8xi1>, vector<1x8x8xf32>
    %83 = math.rsqrt %82 : vector<1x8x8xf32>
    %84 = arith.mulf %82, %83 : vector<1x8x8xf32>
    %cst_15 = arith.constant 2.000000e-01 : f32
    %85 = vector.broadcast %cst_15 : f32 to vector<1x8x8xf32>
    %86 = arith.subf %84, %85 : vector<1x8x8xf32>
    %cst_16 = arith.constant 5.000000e+00 : f32
    %87 = vector.broadcast %cst_16 : f32 to vector<1x8x8xf32>
    %88 = arith.mulf %87, %86 : vector<1x8x8xf32>
    %cst_17 = arith.constant 1.000000e+00 : f32
    %89 = vector.broadcast %cst_17 : f32 to vector<1x8x8xf32>
    %90 = arith.subf %88, %89 : vector<1x8x8xf32>
    %91 = math.exp %90 : vector<1x8x8xf32>
    %cst_18 = arith.constant 1.000000e+00 : f32
    %92 = vector.broadcast %cst_18 : f32 to vector<1x8x8xf32>
    %93 = arith.addf %92, %91 : vector<1x8x8xf32>
    %cst_19 = arith.constant 1.000000e+00 : f32
    %94 = vector.broadcast %cst_19 : f32 to vector<1x8x8xf32>
    %95 = arith.divf %94, %93 : vector<1x8x8xf32>
    %96 = arith.mulf %55, %83 : vector<1x8x8xf32>
    %97 = arith.mulf %60, %83 : vector<1x8x8xf32>
    %98 = vector.shape_cast %76 : vector<8x8xf32> to vector<1x8x1x8xf32>
    %99 = vector.extract_strided_slice %13 {offsets = [0, 0, 0, 0], sizes = [1, 8, 3, 1], strides = [1, 1, 1, 1]} : vector<1x8x3x5xf32> to vector<1x8x3x1xf32>
    %100 = vector.shape_cast %96 : vector<1x8x8xf32> to vector<1x8x1x8xf32>
    %101 = vector.broadcast %99 : vector<1x8x3x1xf32> to vector<1x8x3x8xf32>
    %102 = vector.broadcast %100 : vector<1x8x1x8xf32> to vector<1x8x3x8xf32>
    %103 = arith.mulf %101, %102 : vector<1x8x3x8xf32>
    %104 = vector.broadcast %98 : vector<1x8x1x8xf32> to vector<1x8x3x8xf32>
    %105 = arith.addf %104, %103 : vector<1x8x3x8xf32>
    %106 = vector.extract_strided_slice %13 {offsets = [0, 0, 0, 1], sizes = [1, 8, 3, 1], strides = [1, 1, 1, 1]} : vector<1x8x3x5xf32> to vector<1x8x3x1xf32>
    %107 = vector.shape_cast %97 : vector<1x8x8xf32> to vector<1x8x1x8xf32>
    %108 = vector.broadcast %106 : vector<1x8x3x1xf32> to vector<1x8x3x8xf32>
    %109 = vector.broadcast %107 : vector<1x8x1x8xf32> to vector<1x8x3x8xf32>
    %110 = arith.mulf %108, %109 : vector<1x8x3x8xf32>
    %111 = arith.addf %105, %110 : vector<1x8x3x8xf32>
    %112 = vector.extract_strided_slice %13 {offsets = [0, 0, 0, 2], sizes = [1, 8, 3, 1], strides = [1, 1, 1, 1]} : vector<1x8x3x5xf32> to vector<1x8x3x1xf32>
    %113 = vector.shape_cast %65 : vector<1x8x8xf32> to vector<1x8x1x8xf32>
    %114 = vector.broadcast %112 : vector<1x8x3x1xf32> to vector<1x8x3x8xf32>
    %115 = vector.broadcast %113 : vector<1x8x1x8xf32> to vector<1x8x3x8xf32>
    %116 = arith.mulf %114, %115 : vector<1x8x3x8xf32>
    %117 = arith.addf %111, %116 : vector<1x8x3x8xf32>
    %118 = vector.extract_strided_slice %13 {offsets = [0, 0, 0, 3], sizes = [1, 8, 3, 1], strides = [1, 1, 1, 1]} : vector<1x8x3x5xf32> to vector<1x8x3x1xf32>
    %119 = vector.shape_cast %70 : vector<1x8x8xf32> to vector<1x8x1x8xf32>
    %120 = vector.broadcast %118 : vector<1x8x3x1xf32> to vector<1x8x3x8xf32>
    %121 = vector.broadcast %119 : vector<1x8x1x8xf32> to vector<1x8x3x8xf32>
    %122 = arith.mulf %120, %121 : vector<1x8x3x8xf32>
    %123 = arith.addf %117, %122 : vector<1x8x3x8xf32>
    %124 = vector.extract_strided_slice %13 {offsets = [0, 0, 0, 4], sizes = [1, 8, 3, 1], strides = [1, 1, 1, 1]} : vector<1x8x3x5xf32> to vector<1x8x3x1xf32>
    %125 = vector.shape_cast %95 : vector<1x8x8xf32> to vector<1x8x1x8xf32>
    %126 = vector.broadcast %124 : vector<1x8x3x1xf32> to vector<1x8x3x8xf32>
    %127 = vector.broadcast %125 : vector<1x8x1x8xf32> to vector<1x8x3x8xf32>
    %128 = arith.mulf %126, %127 : vector<1x8x3x8xf32>
    %129 = arith.addf %123, %128 : vector<1x8x3x8xf32>
    %cst_20 = arith.constant dense<0xFF800000> : vector<1x8x3xf32>
    %130 = vector.multi_reduction <maximumf>, %129, %cst_20 [3] : vector<1x8x3x8xf32> to vector<1x8x3xf32>
    %131 = vector.shape_cast %130 : vector<1x8x3xf32> to vector<1x8x3x1xf32>
    %132 = vector.broadcast %131 : vector<1x8x3x1xf32> to vector<1x8x3x8xf32>
    %133 = arith.subf %129, %132 : vector<1x8x3x8xf32>
    %134 = math.exp %133 : vector<1x8x3x8xf32>
    %cst_21 = arith.constant dense<0.000000e+00> : vector<1x8x3xf32>
    %135 = vector.multi_reduction <add>, %134, %cst_21 [3] : vector<1x8x3x8xf32> to vector<1x8x3xf32>
    %136 = vector.shape_cast %135 : vector<1x8x3xf32> to vector<1x8x3x1xf32>
    %137 = vector.broadcast %136 : vector<1x8x3x1xf32> to vector<1x8x3x8xf32>
    %138 = arith.divf %134, %137 : vector<1x8x3x8xf32>
    %139 = vector.shape_cast %96 : vector<1x8x8xf32> to vector<1x8x1x8xf32>
    %140 = vector.broadcast %139 : vector<1x8x1x8xf32> to vector<1x8x3x8xf32>
    %141 = arith.mulf %138, %140 : vector<1x8x3x8xf32>
    %cst_22 = arith.constant dense<0.000000e+00> : vector<1x8x3xf32>
    %142 = vector.multi_reduction <add>, %141, %cst_22 [3] : vector<1x8x3x8xf32> to vector<1x8x3xf32>
    %143 = vector.shape_cast %97 : vector<1x8x8xf32> to vector<1x8x1x8xf32>
    %144 = vector.broadcast %143 : vector<1x8x1x8xf32> to vector<1x8x3x8xf32>
    %145 = arith.mulf %138, %144 : vector<1x8x3x8xf32>
    %cst_23 = arith.constant dense<0.000000e+00> : vector<1x8x3xf32>
    %146 = vector.multi_reduction <add>, %145, %cst_23 [3] : vector<1x8x3x8xf32> to vector<1x8x3xf32>
    %147 = vector.shape_cast %65 : vector<1x8x8xf32> to vector<1x8x1x8xf32>
    %148 = vector.broadcast %147 : vector<1x8x1x8xf32> to vector<1x8x3x8xf32>
    %149 = arith.mulf %138, %148 : vector<1x8x3x8xf32>
    %cst_24 = arith.constant dense<0.000000e+00> : vector<1x8x3xf32>
    %150 = vector.multi_reduction <add>, %149, %cst_24 [3] : vector<1x8x3x8xf32> to vector<1x8x3xf32>
    %151 = vector.shape_cast %70 : vector<1x8x8xf32> to vector<1x8x1x8xf32>
    %152 = vector.broadcast %151 : vector<1x8x1x8xf32> to vector<1x8x3x8xf32>
    %153 = arith.mulf %138, %152 : vector<1x8x3x8xf32>
    %cst_25 = arith.constant dense<0.000000e+00> : vector<1x8x3xf32>
    %154 = vector.multi_reduction <add>, %153, %cst_25 [3] : vector<1x8x3x8xf32> to vector<1x8x3xf32>
    %155 = vector.shape_cast %95 : vector<1x8x8xf32> to vector<1x8x1x8xf32>
    %156 = vector.broadcast %155 : vector<1x8x1x8xf32> to vector<1x8x3x8xf32>
    %157 = arith.mulf %138, %156 : vector<1x8x3x8xf32>
    %cst_26 = arith.constant dense<0.000000e+00> : vector<1x8x3xf32>
    %158 = vector.multi_reduction <add>, %157, %cst_26 [3] : vector<1x8x3x8xf32> to vector<1x8x3xf32>
    %159 = vector.shape_cast %142 : vector<1x8x3xf32> to vector<1x8x3x1xf32>
    %160 = vector.shape_cast %146 : vector<1x8x3xf32> to vector<1x8x3x1xf32>
    %161 = vector.shape_cast %150 : vector<1x8x3xf32> to vector<1x8x3x1xf32>
    %162 = vector.shape_cast %154 : vector<1x8x3xf32> to vector<1x8x3x1xf32>
    %163 = vector.shape_cast %158 : vector<1x8x3xf32> to vector<1x8x3x1xf32>
    %164 = tpu.concatenate %159, %160, %161, %162, %163 in 3 : vector<1x8x3x1xf32>, vector<1x8x3x1xf32>, vector<1x8x3x1xf32>, vector<1x8x3x1xf32>, vector<1x8x3x1xf32> -> vector<1x8x3x5xf32>
    %165 = vector.shape_cast %164 : vector<1x8x3x5xf32> to vector<8x15xf32>
    %cst_27 = arith.constant dense<0.000000e+00> : vector<8x68xf32>
    %166 = tpu.matmul %165, %6, %cst_27 {dimension_numbers = #tpu.dot_dimension_numbers<[1], [0], [0], [1], [0, 0, 1, 1], [], []>} : vector<8x15xf32>, vector<15x68xf32>, vector<8x68xf32> -> vector<8x68xf32>
    %167 = arith.addf %14, %166 : vector<8x68xf32>
    %168 = vector.extract_strided_slice %167 {offsets = [0, 0], sizes = [8, 32], strides = [1, 1]} : vector<8x68xf32> to vector<8x32xf32>
    %cst_28 = arith.constant 0.000000e+00 : f32
    %169 = vector.broadcast %cst_28 : f32 to vector<8x32xf32>
    %170 = arith.maximumf %168, %169 : vector<8x32xf32>
    %171 = vector.extract_strided_slice %167 {offsets = [0, 32], sizes = [8, 32], strides = [1, 1]} : vector<8x68xf32> to vector<8x32xf32>
    %cst_29 = arith.constant dense<0.000000e+00> : vector<8x32xf32>
    %172 = tpu.matmul %170, %7, %cst_29 {dimension_numbers = #tpu.dot_dimension_numbers<[1], [0], [0], [1], [0, 0, 1, 1], [], []>} : vector<8x32xf32>, vector<32x32xf32>, vector<8x32xf32> -> vector<8x32xf32>
    %173 = arith.addf %171, %172 : vector<8x32xf32>
    %cst_30 = arith.constant 0.000000e+00 : f32
    %174 = vector.broadcast %cst_30 : f32 to vector<8x32xf32>
    %175 = arith.maximumf %173, %174 : vector<8x32xf32>
    %176 = vector.extract_strided_slice %167 {offsets = [0, 64], sizes = [8, 4], strides = [1, 1]} : vector<8x68xf32> to vector<8x4xf32>
    %cst_31 = arith.constant dense<0.000000e+00> : vector<8x4xf32>
    %177 = tpu.matmul %175, %8, %cst_31 {dimension_numbers = #tpu.dot_dimension_numbers<[1], [0], [0], [1], [0, 0, 1, 1], [], []>} : vector<8x32xf32>, vector<32x4xf32>, vector<8x4xf32> -> vector<8x4xf32>
    %178 = arith.addf %176, %177 : vector<8x4xf32>
    %179 = math.tanh %178 : vector<8x4xf32>
    %180 = vector.extract_strided_slice %179 {offsets = [0, 0], sizes = [8, 2], strides = [1, 1]} : vector<8x4xf32> to vector<8x2xf32>
    %181 = vector.extract_strided_slice %179 {offsets = [0, 2], sizes = [8, 2], strides = [1, 1]} : vector<8x4xf32> to vector<8x2xf32>
    %cst_32 = arith.constant 1.000000e+00 : f32
    %182 = vector.broadcast %cst_32 : f32 to vector<8x2xf32>
    %183 = arith.addf %181, %182 : vector<8x2xf32>
    %cst_33 = arith.constant 1.100000e+01 : f32
    %184 = vector.broadcast %cst_33 : f32 to vector<8x2xf32>
    %185 = arith.mulf %184, %183 : vector<8x2xf32>
    %cst_34 = arith.constant -2.000000e+01 : f32
    %186 = vector.broadcast %cst_34 : f32 to vector<8x2xf32>
    %187 = arith.addf %186, %185 : vector<8x2xf32>
    %188 = math.exp %187 : vector<8x2xf32>
    %189 = arith.mulf %188, %3 : vector<8x2xf32>
    %190 = arith.addf %180, %189 : vector<8x2xf32>
    %191 = math.tanh %190 : vector<8x2xf32>
    %cst_35 = arith.constant -5.000000e-01 : f32
    %192 = vector.broadcast %cst_35 : f32 to vector<8x2xf32>
    %193 = arith.mulf %192, %3 : vector<8x2xf32>
    %194 = arith.mulf %193, %3 : vector<8x2xf32>
    %195 = arith.subf %194, %187 : vector<8x2xf32>
    %cst_36 = arith.constant 0.918938517 : f32
    %196 = vector.broadcast %cst_36 : f32 to vector<8x2xf32>
    %197 = arith.subf %195, %196 : vector<8x2xf32>
    %198 = arith.mulf %191, %191 : vector<8x2xf32>
    %cst_37 = arith.constant 1.000000e+00 : f32
    %199 = vector.broadcast %cst_37 : f32 to vector<8x2xf32>
    %200 = arith.subf %199, %198 : vector<8x2xf32>
    %cst_38 = arith.constant 1.000000e-07 : f32
    %201 = vector.broadcast %cst_38 : f32 to vector<8x2xf32>
    %202 = arith.addf %200, %201 : vector<8x2xf32>
    %203 = math.log %202 : vector<8x2xf32>
    %204 = arith.subf %197, %203 : vector<8x2xf32>
    %cst_39 = arith.constant dense<0.000000e+00> : vector<8xf32>
    %205 = vector.multi_reduction <add>, %204, %cst_39 [1] : vector<8x2xf32> to vector<8xf32>
    %206 = vector.shape_cast %205 : vector<8xf32> to vector<8x1xf32>
    %207 = tpu.concatenate %191, %206 in 1 : vector<8x2xf32>, vector<8x1xf32> -> vector<8x3xf32>
    %c0_40 = arith.constant 0 : index
    %c0_41 = arith.constant 0 : index
    %208 = vector.load %arg4[%c0_40, %c0_41] : memref<8x3xf32, #tpu.memory_space<vmem>>, vector<8x3xf32>
    tpu.vector_store %arg4[%c0_40, %c0_41], %207 {strides = array<i32>} : memref<8x3xf32, #tpu.memory_space<vmem>>, vector<8x3xf32>,
    return
  }
  func.func @transform_0(%arg0: i32) -> (i32, i32, i32) {
    %c0_i32 = arith.constant 0 : i32
    %c0_i32_0 = arith.constant 0 : i32
    %c0_i32_1 = arith.constant 0 : i32
    return %arg0, %c0_i32, %c0_i32_0 : i32, i32, i32
  }
  func.func @transform_1(%arg0: i32) -> (i32, i32, i32) {
    %c0_i32 = arith.constant 0 : i32
    %c0_i32_0 = arith.constant 0 : i32
    %c0_i32_1 = arith.constant 0 : i32
    return %arg0, %c0_i32, %c0_i32_0 : i32, i32, i32
  }
  func.func @transform_2(%arg0: i32) -> (i32, i32) {
    %c0_i32 = arith.constant 0 : i32
    %c0_i32_0 = arith.constant 0 : i32
    %c0_i32_1 = arith.constant 0 : i32
    return %c0_i32, %c0_i32_0 : i32, i32
  }
  func.func @transform_3(%arg0: i32) -> (i32, i32) {
    %c0_i32 = arith.constant 0 : i32
    %c0_i32_0 = arith.constant 0 : i32
    return %arg0, %c0_i32 : i32, i32
  }
}

</mosaic_0001>

<bundles_post_ra>
// kernel: actor_forward.1
= control target key start
LH: loop header
LB: loop body
LE: loop exit
PB: predicated region body
PF: predicated region fallthrough
CT: control target
= control target key end

     0   :  { %s2951_s12 = smov 0   ;;  %s4151_s0 = inlined_call_operand.vmem [shape: f32[2,8,8], index: 0, kind: input, shape index: {}]   ;;  %s4152_s1 = inlined_call_operand.vmem [shape: f32[2,8,2], index: 1, kind: input, shape index: {}]   ;;  %s4153_s2 = inlined_call_operand.vmem [shape: f32[96,128], index: 2, kind: input, shape index: {}]   ;;  %s4154_s3 = inlined_call_operand.vmem [shape: f32[16,3], index: 3, kind: output, shape index: {}]  }
   0x1 LB: > { %s2679_s13 = sadd.s32 4294967295, %s2896_s12   ;;  %p2683_p0 = scmp.ge.s32.totalorder %s2896_s12, 1  ;;  %s2896_s12 = sphi %s2951_s12, %s13_s12  }
   0x2   : > { %p145_p1 = scmp.lt.s32.totalorder %s2896_s12, 3 }
   0x4   : > { %p146_p2 = pnand %p2683_p0, %p145_p1 }
   0x6   : > { %149 = sbr.rel (%p146_p2) target bundleno = 3164 (0xc5c), region = 32 }
   0xd   : > { %v185_v0 = vld [vmem:[%s4153_s2] sm:$0xff]  ;;  %p171_p3 = scmp.lt.s32.totalorder %s2679_s13, 1  ;;  %v4157_v1 = vmov 0.0   ;;  %vm2899_vm0 = vmmov 0   ;;  %v2900_v2 = vmov 1   ;;  %v4159_v3 = vmov 0  }
   0xe   : > { %2721 = vmatprep.subr.mxu0 %v4157_v1  ;;  %2723 = vmatprep.mubr.msk.f32.mxu0 %vm2899_vm0, %v4157_v1  ;;  %vm201_vm1 = vcmask 64512   ;;  %v2902_v8 = vmov 2   ;;  %v2903_v18 = vmov 683565275   ;;  %v2904_v20 = vmov 2475754826  }
   0xf   : > { %2722 = vmatpush3.msra.mxu0 %v185_v0  ;;  %s4252_s13 = smov (!%p171_p3, %s2679_s13), 1  ;;  %2816 = vset.pattern.permute.xlu0 %v2900_v2  ;;  %v2905_v22 = vmov 2131351028   ;;  %v2906_v24 = vmov 2102212464   ;;  %s2909_s20 = smov 122  }
  0x10   : > { %2817 = vset.pattern.permute.xlu1 %v4159_v3  ;;  %2730 = vmatprep.mubr.msk.f32.mxu1 %vm2899_vm0, %v4157_v1  ;;  %s2969_s16 = sshll.u32 %s4252_s13, 3  ;;  %v2907_v26 = vmov 920167782   ;;  %v2908_v33 = vmov 1326507024   ;;  %s2911_s21 = smov 121  }
  0x11   : > { %s174_s19 = scalar_lea.vmem %s4151_s0, %s2969_s16  ;;  %s2912_s22 = smov 124  }
  0x12   : > { %v2975_v4 = vld [vmem:[%s174_s19] sm:$0xff]  ;;  %s2913_s23 = smov 123   ;;  %s2914_s24 = smov 127  }
  0x13   : > { %2724 = vmatmul.mubr.msk.f32.vlgmr.msra.gmra.mrb[0].mxu0 %vm201_vm1, %v2975_v4  ;;  %609 = vperm.xlu0 %2816, %v2975_v4   ;;  %v2980_v5 = vsub.f32 1.5707964, %v2975_v4  ;;  %s2915_s27 = smov 118   ;;  %s2922_s5 = smov 10  }
  0x14   : > { %2741 = vmatprep.mubr.msk.f32.mxu0 %vm2899_vm0, %v4157_v1  ;;  %s2923_s6 = smov 5   ;;  %s2924_s17 = smov 15  }
  0x15   : > { %v353_v6 = vand.u32 2139095040, %v2980_v5  ;;  %v350_v9 = vand.u32 2147483647, %v2980_v5  ;;  %vm352_vm9 = vcmp.lt.s32.totalorder %v2980_v5, 0  ;;  %s2925_s18 = smov 113   ;;  %s2927_s28 = smov 81  }
  0x16   : > { %s178_s4 = scalar_lea.vmem %s4152_s1, %s2969_s16  ;;  %s2930_s7 = smov 49  }
  0x17   : > { %v354_v7 = vshrl.u32 %v353_v6, 23  ;;  %2819 = vset.pattern.permute.xlu0 %v2902_v8  ;;  %v357_v12 = vand.u32 8388607, %v350_v9  ;;  %vm351_vm10 = vcmp.le.f32.partialorder %v350_v9, 0.7853982  ;;  %s182_s10 = scalar_lea.vmem %s4154_s3, %s2969_s16 }
  0x19   : > { %v2689_v10 = vadd.s32 4294967169, %v354_v7  ;;  %v358_v15 = vor.u32 8388608, %v357_v12 }
  0x1b   : > { %v360_v11 = vadd.s32 1, %v2689_v10  ;;  %v398_v35 = vshll.u32 %v358_v15, 8 }
  0x1d   : > { %vm361_vm2 = vcmp.gt.s32.totalorder %v360_v11, 0 }
  0x1e   : > { %v362_v13 = vsel %vm361_vm2, %v360_v11, 0  ;;  %vm442_vm2 = vweird.f32 %v2980_v5 }
  0x1f   : > { %v364_v14 = vand.u32 31, %v362_v13  ;;  %v363_v16 = vshrl.u32 %v362_v13, 5 }
  0x21   : > { %v365_v17 = vsub.s32 32, %v364_v14  ;;  %v367_v19 = vshll.u32 %v2903_v18, %v364_v14  ;;  %v370_v21 = vshll.u32 %v2904_v20, %v364_v14  ;;  %v373_v23 = vshll.u32 %v2905_v22, %v364_v14 }
  0x22   : > { %v376_v25 = vshll.u32 %v2906_v24, %v364_v14  ;;  %v379_v27 = vshll.u32 %v2907_v26, %v364_v14  ;;  %vm382_vm3 = vcmp.lt.s32.totalorder %v363_v16, 1  ;;  %vm385_vm4 = vcmp.lt.s32.totalorder %v363_v16, 4 }
  0x23   : > { %v366_v28 = vshrl.u32 %v2903_v18, %v365_v17  ;;  %v368_v29 = vshrl.u32 %v2904_v20, %v365_v17  ;;  %v371_v30 = vshrl.u32 %v2905_v22, %v365_v17  ;;  %v374_v31 = vshrl.u32 %v2906_v24, %v365_v17 }
  0x24   : > { %v377_v32 = vshrl.u32 %v2907_v26, %v365_v17  ;;  %v380_v34 = vshrl.u32 %v2908_v33, %v365_v17  ;;  %vm383_vm5 = vcmp.lt.s32.totalorder %v363_v16, 2  ;;  %vm384_vm6 = vcmp.lt.s32.totalorder %v363_v16, 3 }
  0x25   : > { %v369_v36 = vor.u32 %v368_v29, %v367_v19  ;;  %v372_v37 = vor.u32 %v371_v30, %v370_v21  ;;  %v375_v38 = vor.u32 %v374_v31, %v373_v23 }
  0x26   : > { %v378_v39 = vor.u32 %v377_v32, %v376_v25  ;;  %v381_v40 = vor.u32 %v380_v34, %v379_v27 }
  0x27   : > { %v386_v41 = vsel %vm382_vm3, %v366_v28, %v369_v36  ;;  %v387_v42 = vsel %vm385_vm4, %v375_v38, 2102212464  ;;  %v390_v43 = vsel %vm382_vm3, %v369_v36, %v372_v37  ;;  %v394_v44 = vsel %vm382_vm3, %v372_v37, %v375_v38 }
  0x28   : > { %v388_v45 = vsel %vm384_vm6, %v372_v37, %v387_v42  ;;  %v391_v46 = vsel %vm385_vm4, %v378_v39, 920167782  ;;  %v395_v47 = vsel %vm385_vm4, %v381_v40, 1326507024  ;;  %vm1105_vm3 = vcmask 1041409  }
  0x29   : > { %v392_v48 = vsel %vm384_vm6, %v375_v38, %v391_v46  ;;  %v396_v49 = vsel %vm384_vm6, %v378_v39, %v395_v47  ;;  %v389_v50 = vsel %vm383_vm5, %v386_v41, %v388_v45  ;;  %v4155_v45 = vmov 3  }
  0x2a   : > { %v393_v51 = vsel %vm383_vm5, %v390_v43, %v392_v48  ;;  %v397_v52 = vsel %vm383_vm5, %v394_v44, %v396_v49  ;;  %v405_v57 = vmul.u32 %v398_v35, %v389_v50  ;;  %vm1107_vm4 = vcmask 1042434  }
  0x2b   : > { %v2989_v53 = vmul.u32.u64.low %v398_v35, %v397_v52  ;;  %v2990_v54 = vmul.u32.u64.high %v398_v35, %v397_v52, %v2989_v53  ;;  %v2992_v55 = vmul.u32.u64.low %v398_v35, %v393_v51  ;;  %v2993_v56 = vmul.u32.u64.high %v398_v35, %v393_v51, %v2992_v55 }
  0x2c   : > { %vm1109_vm5 = vcmask 1043459   ;;  %vm1111_vm6 = vcmask 1044484  }
  0x2d   : > { %vm407_vm7 = vc.u32 %v2990_v54, %v2992_v55  ;;  %v408_v58 = vadd.s32 1, %v2993_v56  ;;  %v406_v12 = vadd.s32 %v2992_v55, %v2990_v54 }
  0x2f   : > { %v409_v59 = vsel %vm407_vm7, %v408_v58, %v2993_v56  ;;  %vm1113_vm7 = vcmask 1045509  }
  0x30   : > { %v410_v60 = vadd.s32 %v409_v59, %v405_v57 }
  0x32   : > { %v411_v61 = vadd.s32 536870912, %v410_v60 }
  0x34   : > { %v412_v62 = vshrl.u32 %v411_v61, 30 }
  0x36   : > { %v413_v63 = vshll.u32 %v412_v62, 30  ;;  %v436_v24 = vsub.s32 4, %v412_v62 }
  0x38   : > { %v414_v0 = vsub.s32 %v410_v60, %v413_v63  ;;  %v437_v27 = vsel %vm352_vm9, %v436_v24, %v412_v62 }
  0x39   : > { %v439_v30 = vsel %vm351_vm10, 0, %v437_v27 }
  0x3a   : > { %v416_v6 = vsub.s32 0, %v414_v0  ;;  %v546_v31 = vadd.s32 3, %v439_v30  ;;  %v443_v33 = vand.u32 3, %v439_v30 }
  0x3c   : > { %v2690_v7 = vmin.u32 %v416_v6, %v414_v0  ;;  %v547_v32 = vand.u32 3, %v546_v31  ;;  %vm448_vm12 = vcmp.eq.s32.totalorder %v443_v33, 2  ;;  %vm445_vm14 = vcmp.eq.s32.totalorder %v443_v33, 0 }
  0x3d   : > { %vm444_vm1 = vcmp.lt.s32.totalorder %v443_v33, 2 }
  0x3e   : > { %v418_v10 = vclz %v2690_v7  ;;  %vm552_vm11 = vcmp.eq.s32.totalorder %v547_v32, 2  ;;  %vm549_vm13 = vcmp.eq.s32.totalorder %v547_v32, 0  ;;  %vm548_vm15 = vcmp.lt.s32.totalorder %v547_v32, 2 }
  0x40   : > { %v2691_v11 = vadd.s32 4294967294, %v418_v10 }
  0x42   : > { %vm2692_vm8 = vcmp.lt.s32.totalorder %v2691_v11, 0 }
  0x43   : > { %v421_v13 = vsel %vm2692_vm8, 0, %v2691_v11  ;;  %vm1115_vm8 = vcmask 1046534  }
  0x44   : > { %v422_v14 = vsub.s32 32, %v421_v13  ;;  %v423_v15 = vshll.u32 %v414_v0, %v421_v13  ;;  %v426_v16 = vsub.s32 4294967266, %v421_v13 }
  0x46   : > { %v424_v17 = vshrl.u32 %v406_v12, %v422_v14  ;;  %v427_v18 = vadd.s32 127, %v426_v16 }
  0x48   : > { %v425_v19 = vor.u32 %v424_v17, %v423_v15  ;;  %v428_v20 = vshll.u32 %v427_v18, 23 }
  0x4a   : > { %v429_v21 = vor.u32 4788187, %v428_v20  ;;  %v432_v22 = vcvt.s32.f32 %v425_v19 }
  0x4c   : > { %v430_v23 = vand.u32 2147483647, %v429_v21 }
  0x4e   : > { %v433_v25 = vmul.f32 %v432_v22, %v430_v23 }
  0x50   : > { %v434_v26 = vxor.u32 2147483648, %v433_v25 }
  0x52   : > { %v435_v28 = vsel %vm352_vm9, %v434_v26, %v433_v25  ;;  %vm1117_vm9 = vcmask 1047559  }
  0x53   : > { %v438_v29 = vsel %vm351_vm10, %v2980_v5, %v435_v28  ;;  %v287_v5 = vlaneseq }
  0x54   : > { %2840 = vcosq.f32 %v438_v29 }
  0x55   : > { %2842 = vsinq.f32 %v438_v29  ;;  %v3012_v46 = vshrl.u32 %v287_v5, 7 }
  0x57   : > { %v3015_v47 = vsub.s32 0, %v3012_v46  ;;  %v3018_v48 = vsub.s32 1, %v3012_v46  ;;  %v3025_v54 = vsub.s32 2, %v3012_v46  ;;  %v3029_v59 = vsub.s32 3, %v3012_v46 }
  0x58   : > { %v3034_v61 = vsub.s32 4, %v3012_v46  ;;  %v3041_v7 = vsub.s32 5, %v3012_v46  ;;  %v3048_v14 = vsub.s32 6, %v3012_v46  ;;  %v3057_v21 = vsub.s32 7, %v3012_v46 }
  0x5e   : > { %v2841_v34 = vpop.eup %2840 }
  0x5f   : > { %v2843_v35 = vpop.eup %2842  ;;  %v449_v36 = vxor.u32 2147483648, %v2841_v34 }
  0x60   : > { %v446_v37 = vxor.u32 2147483648, %v2843_v35 }
  0x61   : > { %v554_v9 = vsel %vm552_vm11, %v449_v36, %v2843_v35  ;;  %v450_v38 = vsel %vm448_vm12, %v449_v36, %v2843_v35  ;;  %vm1960_vm11 = vcmask 59392   ;;  %vm2328_vm12 = vcmask 1046528  }
  0x62   : > { %v551_v39 = vsel %vm549_vm13, %v2841_v34, %v446_v37  ;;  %v447_v40 = vsel %vm445_vm14, %v2841_v34, %v446_v37  ;;  %vm2921_vm13 = vmmov 1  }
  0x63   : > { %v555_v41 = vsel %vm548_vm15, %v551_v39, %v554_v9  ;;  %v451_v42 = vsel %vm444_vm1, %v447_v40, %v450_v38  ;;  %vm2757_vm14 = vmpackc.low %vm2328_vm12, %vm2921_vm13  ;;  %vm2209_vm15 = vcmask 7168   ;;  %vm2218_vm1 = vcmask 15360  }
  0x64   : > { %v556_v43 = vsel %vm442_vm2, nan, %v555_v41  ;;  %v452_v44 = vsel %vm442_vm2, nan, %v451_v42  ;;  %vm2227_vm2 = vcmask 23552  }
  0x65   : > { %774 = vrot.lane.b32.xlu0 %v556_v43, %s2909_s20  ;;  %836 = vrot.lane.b32.xlu1 %v452_v44, %s2909_s20 }
  0x69   : > { %660 = vperm.xlu0 %2819, %v2975_v4   ;;  %558 = vperm.xlu1 %2817, %v2975_v4  }
  0x6d   : > { %2818 = vset.pattern.permute.xlu1 %v4155_v45  ;;  %762 = vrot.lane.b32.xlu0 %v452_v44, %s2911_s21 }
  0x6e   : > { %711 = vperm.xlu1 %2818, %v2975_v4  }
  0x71   : > { %898 = vrot.lane.b32.xlu0 %v556_v43, %s2912_s22 }
  0x72   : > { %825 = vrot.lane.b32.xlu1 %v556_v43, %s2911_s21 }
  0x73   : > { %2820 = vset.pattern.permute.xlu1 %v2902_v8 }
  0x75   : > { %887 = vrot.lane.b32.xlu0 %v452_v44, %s2913_s23 }
  0x76   : > { %960 = vrot.lane.b32.xlu1 %v452_v44, %s2912_s22 }
  0x7a   : > { %949 = vrot.lane.b32.xlu1 %v556_v43, %s2913_s23 }
  0x92   : > { %v610_v49 = vpop.permute.xlu0 %609 }
  0x93   : > { %v614_v50 = vrot.slane %v610_v49, %v3015_v47  ;;  %v618_v51 = vrot.slane %v610_v49, %v3018_v48  ;;  %v622_v58 = vrot.slane %v610_v49, %v3025_v54  ;;  %v626_v6 = vrot.slane %v610_v49, %v3029_v59 }
  0x94   : > { %v630_v13 = vrot.slane %v610_v49, %v3034_v61  ;;  %v634_v18 = vrot.slane %v610_v49, %v3041_v7  ;;  %v638_v26 = vrot.slane %v610_v49, %v3048_v14  ;;  %v642_v31 = vrot.slane %v610_v49, %v3057_v21 }
  0x95   : > { %v651_v52 = vsub.f32 %v2975_v4, %v614_v50  ;;  %v652_v53 = vsub.f32 %v2975_v4, %v618_v51  ;;  %v653_v0 = vsub.f32 %v2975_v4, %v622_v58  ;;  %v654_v12 = vsub.f32 %v2975_v4, %v626_v6 }
  0x96   : > { %v655_v17 = vsub.f32 %v2975_v4, %v630_v13  ;;  %v656_v25 = vsub.f32 %v2975_v4, %v634_v18  ;;  %v657_v30 = vsub.f32 %v2975_v4, %v638_v26  ;;  %v658_v9 = vsub.f32 %v2975_v4, %v642_v31  ;;  %v2687_v26 = vld [vmem:[%s4153_s2 + $0x8] ss:$0 sm:$0xff] }
  0xd7   : > { %v775_v55 = vpop.permute.xlu0 %774  ;;  %v837_v60 = vpop.permute.xlu1 %836 }
  0xd8   : > { %v777_v56 = vmul.f32 %v775_v55, %v651_v52  ;;  %v778_v57 = vmul.f32 %v775_v55, %v652_v53  ;;  %v840_v62 = vmul.f32 %v837_v60, %v652_v53  ;;  %v839_v63 = vmul.f32 %v837_v60, %v651_v52 }
  0xd9   : > { %v841_v10 = vmul.f32 %v837_v60, %v653_v0  ;;  %v779_v11 = vmul.f32 %v775_v55, %v653_v0  ;;  %v842_v15 = vmul.f32 %v837_v60, %v654_v12  ;;  %v780_v16 = vmul.f32 %v775_v55, %v654_v12 }
  0xda   : > { %793 = vrot.lane.b32.xlu0 %v777_v56, %s2914_s24  ;;  %795 = vrot.lane.b32.xlu1 %v778_v57, %s2914_s24  ;;  %v843_v23 = vmul.f32 %v837_v60, %v655_v17  ;;  %v781_v24 = vmul.f32 %v775_v55, %v655_v17  ;;  %v844_v28 = vmul.f32 %v837_v60, %v656_v25 }
  0xdb   : > { %v782_v29 = vmul.f32 %v775_v55, %v656_v25  ;;  %v845_v36 = vmul.f32 %v837_v60, %v657_v30  ;;  %v783_v37 = vmul.f32 %v775_v55, %v657_v30  ;;  %v846_v40 = vmul.f32 %v837_v60, %v658_v9 }
  0xdc   : > { %v784_v41 = vmul.f32 %v775_v55, %v658_v9 }
  0xde   : > { %857 = vrot.lane.b32.xlu1 %v840_v62, %s2914_s24  ;;  %855 = vrot.lane.b32.xlu0 %v839_v63, %s2914_s24 }
  0xe2   : > { %859 = vrot.lane.b32.xlu1 %v841_v10, %s2914_s24  ;;  %797 = vrot.lane.b32.xlu0 %v779_v11, %s2914_s24 }
  0xe6   : > { %v3052_v19 = vpop.f32.mrb[0].mxu0  ;;  %861 = vrot.lane.b32.xlu1 %v842_v15, %s2914_s24  ;;  %799 = vrot.lane.b32.xlu0 %v780_v16, %s2914_s24 }
  0xe7   : > { %v2725_v20 = vpop.f32.mrb[1].mxu0  ;;  %v3116_v30 = vadd.f32 %v2687_v26, %v3052_v19 }
  0xe8   : > { %v3059_v22 = vpop.permute.xlu1 %558  ;;  %v3063_v27 = vpop.permute.xlu0 %660 }
  0xe9   : > { %4184 = vst [vmem:[#allocation2_spill] sm:$0xff] %v3116_v30 }
  0xea   : > { %863 = vrot.lane.b32.xlu1 %v843_v23, %s2914_s24  ;;  %801 = vrot.lane.b32.xlu0 %v781_v24, %s2914_s24 }
  0xec   : > { %v3073_v35 = vpop.permute.xlu0 %762 }
  0xed   : > { %v712_v32 = vpop.permute.xlu1 %711 }
  0xee   : > { %865 = vrot.lane.b32.xlu1 %v844_v28, %s2914_s24  ;;  %803 = vrot.lane.b32.xlu0 %v782_v29, %s2914_s24  ;;  %v720_v33 = vrot.slane %v712_v32, %v3018_v48  ;;  %v716_v34 = vrot.slane %v712_v32, %v3015_v47  ;;  %v728_v42 = vrot.slane %v712_v32, %v3029_v59 }
  0xef   : > { %v724_v43 = vrot.slane %v712_v32, %v3025_v54  ;;  %v736_v53 = vrot.slane %v712_v32, %v3041_v7  ;;  %v732_v56 = vrot.slane %v712_v32, %v3034_v61  ;;  %v744_v55 = vrot.slane %v712_v32, %v3057_v21 }
  0xf0   : > { %v754_v38 = vsub.f32 %v2975_v4, %v720_v33  ;;  %v753_v39 = vsub.f32 %v2975_v4, %v716_v34  ;;  %v899_v44 = vpop.permute.xlu0 %898  ;;  %v756_v51 = vsub.f32 %v2975_v4, %v728_v42  ;;  %v740_v57 = vrot.slane %v712_v32, %v3048_v14 }
  0xf1   : > { %v755_v52 = vsub.f32 %v2975_v4, %v724_v43  ;;  %v758_v62 = vsub.f32 %v2975_v4, %v736_v53  ;;  %v757_v63 = vsub.f32 %v2975_v4, %v732_v56  ;;  %v760_v10 = vsub.f32 %v2975_v4, %v744_v55  ;;  %v3098_v12 = vpop.permute.xlu1 %825 }
  0xf2   : > { %867 = vrot.lane.b32.xlu1 %v845_v36, %s2914_s24  ;;  %805 = vrot.lane.b32.xlu0 %v783_v37, %s2914_s24  ;;  %v902_v49 = vmul.f32 %v899_v44, %v754_v38  ;;  %v901_v50 = vmul.f32 %v899_v44, %v753_v39  ;;  %v904_v58 = vmul.f32 %v899_v44, %v756_v51 }
  0xf3   : > { %v903_v60 = vmul.f32 %v899_v44, %v755_v52  ;;  %v906_v0 = vmul.f32 %v899_v44, %v758_v62  ;;  %v905_v6 = vmul.f32 %v899_v44, %v757_v63  ;;  %v759_v11 = vsub.f32 %v2975_v4, %v740_v57 }
  0xf4   : > { %v908_v13 = vmul.f32 %v899_v44, %v760_v10  ;;  %v3121_v31 = vpop.permute.xlu0 %887  ;;  %v673_v55 = vrot.slane %v3063_v27, %v3025_v54  ;;  %v567_v57 = vrot.slane %v3059_v22, %v3018_v48 }
  0xf5   : > { %v907_v15 = vmul.f32 %v899_v44, %v759_v11  ;;  %v961_v16 = vpop.permute.xlu1 %960  ;;  %v669_v44 = vrot.slane %v3063_v27, %v3018_v48 }
  0xf6   : > { %869 = vrot.lane.b32.xlu1 %v846_v40, %s2914_s24  ;;  %807 = vrot.lane.b32.xlu0 %v784_v41, %s2914_s24  ;;  %v964_v17 = vmul.f32 %v961_v16, %v754_v38  ;;  %v963_v18 = vmul.f32 %v961_v16, %v753_v39  ;;  %v966_v20 = vmul.f32 %v961_v16, %v756_v51 }
  0xf7   : > { %v965_v23 = vmul.f32 %v961_v16, %v755_v52  ;;  %v968_v24 = vmul.f32 %v961_v16, %v758_v62  ;;  %v967_v25 = vmul.f32 %v961_v16, %v757_v63  ;;  %v970_v28 = vmul.f32 %v961_v16, %v760_v10 }
  0xf8   : > { %v969_v29 = vmul.f32 %v961_v16, %v759_v11  ;;  %v677_v52 = vrot.slane %v3063_v27, %v3029_v59  ;;  %v3152_v53 = vsub.f32 %v2975_v4, %v669_v44  ;;  %v571_v62 = vrot.slane %v3059_v22, %v3025_v54 }
  0xf9   : > { %v3123_v32 = vpop.permute.xlu1 %949  ;;  %v3177_v11 = vsub.f32 %v2975_v4, %v673_v55 }
  0xfa   : > { %919 = vrot.lane.b32.xlu0 %v902_v49, %s2914_s24  ;;  %917 = vrot.lane.b32.xlu1 %v901_v50, %s2914_s24  ;;  %v665_v49 = vrot.slane %v3063_v27, %v3015_v47  ;;  %v3168_v63 = vsub.f32 %v2975_v4, %v677_v52  ;;  %v953_v45 = vmul.f32 %v3123_v32, %v3152_v53 }
  0xfc   : > { %v3155_v56 = vsub.f32 %v2975_v4, %v665_v49  ;;  %v893_v26 = vmul.f32 %v3121_v31, %v3168_v63  ;;  %v579_v49 = vrot.slane %v3059_v22, %v3034_v61 }
  0xfe   : > { %923 = vrot.lane.b32.xlu0 %v904_v58, %s2914_s24  ;;  %921 = vrot.lane.b32.xlu1 %v903_v60, %s2914_s24  ;;  %v890_v10 = vmul.f32 %v3121_v31, %v3155_v56 }
 0x102   : > { %927 = vrot.lane.b32.xlu0 %v906_v0, %s2914_s24  ;;  %925 = vrot.lane.b32.xlu1 %v905_v6, %s2914_s24  ;;  %v685_v0 = vrot.slane %v3063_v27, %v3041_v7  ;;  %v891_v6 = vmul.f32 %v3121_v31, %v3152_v53 }
 0x106   : > { %931 = vrot.lane.b32.xlu0 %v908_v13, %s2914_s24  ;;  %929 = vrot.lane.b32.xlu1 %v907_v15, %s2914_s24  ;;  %v681_v13 = vrot.slane %v3063_v27, %v3034_v61  ;;  %v601_v15 = vsub.f32 %v2975_v4, %v567_v57  ;;  %v563_v57 = vrot.slane %v3059_v22, %v3015_v47 }
 0x108   : > { %v829_v44 = vmul.f32 %v3098_v12, %v601_v15 }
 0x10a   : > { %981 = vrot.lane.b32.xlu1 %v964_v17, %s2914_s24  ;;  %979 = vrot.lane.b32.xlu0 %v963_v18, %s2914_s24 }
 0x10e   : > { %985 = vrot.lane.b32.xlu1 %v966_v20, %s2914_s24  ;;  %983 = vrot.lane.b32.xlu0 %v965_v23, %s2914_s24  ;;  %v602_v23 = vsub.f32 %v2975_v4, %v571_v62 }
 0x112   : > { %989 = vrot.lane.b32.xlu1 %v968_v24, %s2914_s24  ;;  %987 = vrot.lane.b32.xlu0 %v967_v25, %s2914_s24  ;;  %v3184_v24 = vsub.f32 %v2975_v4, %v685_v0  ;;  %v693_v25 = vrot.slane %v3063_v27, %v3057_v21 }
 0x116   : > { %993 = vrot.lane.b32.xlu1 %v970_v28, %s2914_s24  ;;  %991 = vrot.lane.b32.xlu0 %v969_v29, %s2914_s24  ;;  %v892_v28 = vmul.f32 %v3121_v31, %v3177_v11  ;;  %v3193_v29 = vsub.f32 %v2975_v4, %v681_v13  ;;  %v830_v13 = vmul.f32 %v3098_v12, %v602_v23 }
 0x11a   : > { %276 = vrot.lane.b32.xlu1 %v3116_v30, %s2913_s23 }
 0x11e   : > { %279 = vrot.lane.b32.xlu1 %v3116_v30, %s2915_s27  ;;  %s2926_s27 = smov 47  }
 0x14c   : > { %v3125_v33 = vpop.permute.xlu0 %793  ;;  %v796_v34 = vpop.permute.xlu1 %795 }
 0x150   : > { %v3127_v36 = vpop.permute.xlu0 %855  ;;  %v858_v37 = vpop.permute.xlu1 %857 }
 0x154   : > { %v798_v9 = vpop.permute.xlu0 %797  ;;  %v860_v38 = vpop.permute.xlu1 %859 }
 0x158   : > { %v3129_v19 = vpop.permute.xlu0 %799  ;;  %v3131_v39 = vpop.permute.xlu1 %861 }
 0x15c   : > { %v3133_v40 = vpop.permute.xlu0 %801  ;;  %v3135_v41 = vpop.permute.xlu1 %863 }
 0x160   : > { %v3137_v42 = vpop.permute.xlu0 %803  ;;  %v3139_v43 = vpop.permute.xlu1 %865 }
 0x164   : > { %v3145_v50 = vpop.permute.xlu0 %805  ;;  %v3147_v51 = vpop.permute.xlu1 %867 }
 0x168   : > { %v3161_v58 = vpop.permute.xlu0 %807  ;;  %v3163_v60 = vpop.permute.xlu1 %869 }
 0x16c   : > { %v920_v16 = vpop.permute.xlu0 %919  ;;  %v918_v17 = vpop.permute.xlu1 %917 }
 0x16d   : > { %v942_v18 = vsub.f32 %v891_v6, %v920_v16  ;;  %v941_v20 = vsub.f32 %v890_v10, %v918_v17  ;;  %v766_v6 = vmul.f32 %v3073_v35, %v601_v15  ;;  %v3201_v10 = vadd.f32 %v858_v37, %v829_v44 }
 0x16e   : > { %v767_v16 = vmul.f32 %v3073_v35, %v602_v23  ;;  %v895_v17 = vmul.f32 %v3121_v31, %v3184_v24  ;;  %v604_v37 = vsub.f32 %v2975_v4, %v579_v49  ;;  %v587_v15 = vrot.slane %v3059_v22, %v3048_v14 }
 0x16f   : > { %1607 = vperm.xlu0 %2819, %v941_v20   ;;  %1610 = vperm.xlu1 %2820, %v942_v18   ;;  %v894_v18 = vmul.f32 %v3121_v31, %v3193_v29  ;;  %v3210_v20 = vsub.f32 %v2975_v4, %v693_v25  ;;  %v600_v25 = vsub.f32 %v2975_v4, %v563_v57 }
 0x170   : > { %v924_v52 = vpop.permute.xlu0 %923  ;;  %v922_v55 = vpop.permute.xlu1 %921  ;;  %v3217_v44 = vsub.f32 %v767_v16, %v798_v9  ;;  %v606_v16 = vsub.f32 %v2975_v4, %v587_v15 }
 0x171   : > { %v944_v62 = vsub.f32 %v893_v26, %v924_v52  ;;  %v943_v0 = vsub.f32 %v892_v28, %v922_v55  ;;  %v3212_v26 = vsub.f32 %v766_v6, %v796_v34  ;;  %v3219_v52 = vadd.f32 %v860_v38, %v830_v13 }
 0x172   : > { %v575_v34 = vrot.slane %v3059_v22, %v3029_v59  ;;  %v897_v49 = vmul.f32 %v3121_v31, %v3210_v20  ;;  %v769_v38 = vmul.f32 %v3073_v35, %v604_v37  ;;  %v832_v6 = vmul.f32 %v3098_v12, %v604_v37 }
 0x173   : > { %1616 = vperm.xlu0 %2819, %v944_v62   ;;  %1613 = vperm.xlu1 %2820, %v943_v0   ;;  %v1026_v0 = vmul.f32 %v3201_v10, %v3201_v10  ;;  %v1018_v9 = vmul.f32 %v3212_v26, %v3212_v26  ;;  %v1019_v57 = vmul.f32 %v3217_v44, %v3217_v44 }
 0x174   : > { %v928_v28 = vpop.permute.xlu0 %927  ;;  %v926_v23 = vpop.permute.xlu1 %925  ;;  %v828_v37 = vmul.f32 %v3098_v12, %v600_v25  ;;  %v603_v15 = vsub.f32 %v2975_v4, %v575_v34 }
 0x175   : > { %v946_v55 = vsub.f32 %v895_v17, %v928_v28  ;;  %v945_v62 = vsub.f32 %v894_v18, %v926_v23  ;;  %v1027_v18 = vmul.f32 %v3219_v52, %v3219_v52  ;;  %v3240_v23 = vsub.f32 %v769_v38, %v3133_v40 }
 0x176   : > { %v771_v40 = vmul.f32 %v3073_v35, %v606_v16  ;;  %v834_v38 = vmul.f32 %v3098_v12, %v606_v16 }
 0x177   : > { %1622 = vperm.xlu0 %2819, %v946_v55   ;;  %1619 = vperm.xlu1 %2820, %v945_v62   ;;  %v3243_v55 = vadd.f32 %v3135_v41, %v832_v6  ;;  %v1034_v62 = vadd.f32 %v1026_v0, %v1018_v9  ;;  %v765_v0 = vmul.f32 %v3073_v35, %v600_v25 }
 0x178   : > { %v932_v13 = vpop.permute.xlu0 %931  ;;  %v3233_v17 = vpop.permute.xlu1 %929  ;;  %v3256_v9 = vadd.f32 %v3127_v36, %v828_v37  ;;  %v1035_v6 = vadd.f32 %v1027_v18, %v1019_v57  ;;  %v3266_v16 = vadd.f32 %v3147_v51, %v834_v38  ;;  %v831_v25 = vmul.f32 %v3098_v12, %v603_v15 }
 0x179   : > { %v948_v28 = vsub.f32 %v897_v49, %v932_v13  ;;  %v583_v49 = vrot.slane %v3059_v22, %v3041_v7  ;;  %v1021_v13 = vmul.f32 %v3240_v23, %v3240_v23  ;;  %v1029_v53 = vmul.f32 %v3243_v55, %v3243_v55 }
 0x17a   : > { %v3273_v36 = vsub.f32 %v765_v0, %v3125_v33  ;;  %v3282_v37 = vadd.f32 %v3131_v39, %v831_v25  ;;  %v1025_v33 = vmul.f32 %v3256_v9, %v3256_v9 }
 0x17b   : > { %1628 = vperm.xlu0 %2819, %v948_v28   ;;  %2821 = vset.pattern.permute.xlu1 %v4159_v3  ;;  %v3263_v28 = vsub.f32 %v771_v40, %v3145_v50  ;;  %v605_v57 = vsub.f32 %v2975_v4, %v583_v49  ;;  %v591_v50 = vrot.slane %v3059_v22, %v3057_v21 }
 0x17c   : > { %v982_v41 = vpop.permute.xlu1 %981  ;;  %1053 = vperm.xlu1 %2821, %v1034_v62   ;;  %v768_v62 = vmul.f32 %v3073_v35, %v603_v15  ;;  %v689_v15 = vrot.slane %v3063_v27, %v3048_v14  ;;  %v1031_v22 = vmul.f32 %v3266_v16, %v3266_v16  ;;  %v1037_v40 = vadd.f32 %v1029_v53, %v1021_v13 }
 0x17d   : > { %v1004_v34 = vadd.f32 %v982_v41, %v953_v45  ;;  %v955_v45 = vmul.f32 %v3123_v32, %v3168_v63  ;;  %v1023_v49 = vmul.f32 %v3263_v28, %v3263_v28  ;;  %v770_v39 = vmul.f32 %v3073_v35, %v605_v57 }
 0x17e   : > { %v3279_v51 = vsub.f32 %v768_v62, %v3129_v19  ;;  %v1017_v19 = vmul.f32 %v3273_v36, %v3273_v36  ;;  %v833_v38 = vmul.f32 %v3098_v12, %v605_v57  ;;  %v607_v27 = vsub.f32 %v2975_v4, %v591_v50  ;;  %v980_v50 = vpop.permute.xlu0 %979 }
 0x17f   : > { %1738 = vperm.xlu0 %2819, %v1004_v34   ;;  %v1028_v34 = vmul.f32 %v3282_v37, %v3282_v37  ;;  %v3305_v13 = vsub.f32 %v770_v39, %v3137_v42  ;;  %v1039_v25 = vadd.f32 %v1031_v22, %v1023_v49 }
 0x180   : > { %v986_v18 = vpop.permute.xlu1 %985  ;;  %1056 = vperm.xlu1 %2821, %v1035_v6   ;;  %v1020_v0 = vmul.f32 %v3279_v51, %v3279_v51  ;;  %v3302_v6 = vsub.f32 %v2975_v4, %v689_v15  ;;  %v3308_v53 = vadd.f32 %v3139_v43, %v833_v38  ;;  %v1033_v62 = vadd.f32 %v1025_v33, %v1017_v19 }
 0x181   : > { %v1006_v63 = vadd.f32 %v986_v18, %v955_v45  ;;  %v772_v45 = vmul.f32 %v3073_v35, %v607_v27  ;;  %v835_v57 = vmul.f32 %v3098_v12, %v607_v27  ;;  %v2916_v4 = vmov 1983009808  }
 0x182   : > { %v285_v15 = vunpack.c.l.s4 %v2916_v4  ;;  %v896_v42 = vmul.f32 %v3121_v31, %v3302_v6  ;;  %v1036_v43 = vadd.f32 %v1028_v34, %v1020_v0  ;;  %v1030_v33 = vmul.f32 %v3308_v53, %v3308_v53  ;;  %v984_v39 = vpop.permute.xlu0 %983 }
 0x183   : > { %1744 = vperm.xlu0 %2819, %v1006_v63   ;;  %v1022_v63 = vmul.f32 %v3305_v13, %v3305_v13  ;;  %v3322_v35 = vsub.f32 %v772_v45, %v3161_v58  ;;  %v3325_v12 = vadd.f32 %v3163_v60, %v835_v57  ;;  %v2917_v27 = vmov 1934713408  }
 0x184   : > { %v990_v41 = vpop.permute.xlu1 %989  ;;  %1062 = vperm.xlu1 %2821, %v1037_v40   ;;  %v947_v49 = vsub.f32 %v896_v42, %v3233_v17  ;;  %v286_v22 = vunpack.c.0.s8 %v285_v15  ;;  %v952_v40 = vmul.f32 %v3123_v32, %v3155_v56  ;;  %v316_v17 = vunpack.c.l.s4 %v2917_v27 }
 0x185   : > { %v1024_v19 = vmul.f32 %v3322_v35, %v3322_v35  ;;  %v1032_v58 = vmul.f32 %v3325_v12, %v3325_v12  ;;  %v1038_v60 = vadd.f32 %v1030_v33, %v1022_v63  ;;  %v954_v56 = vmul.f32 %v3123_v32, %v3177_v11 }
 0x186   : > { %v1003_v38 = vadd.f32 %v980_v50, %v952_v40  ;;  %v3336_v0 = vsub.s32 %v286_v22, %v3012_v46  ;;  %v317_v50 = vunpack.c.0.s8 %v316_v17  ;;  %v988_v15 = vpop.permute.xlu0 %987  ;;  %v956_v11 = vmul.f32 %v3123_v32, %v3193_v29 }
 0x187   : > { %2823 = vset.pattern.permute.xlu0 %v4159_v3  ;;  %v1040_v57 = vadd.f32 %v1032_v58, %v1024_v19  ;;  %v1005_v4 = vadd.f32 %v984_v39, %v954_v56 }
 0x188   : > { %1050 = vperm.xlu0 %2823, %v1033_v62   ;;  %v3313_v18 = vpop.permute.xlu1 %993  ;;  %1068 = vperm.xlu1 %2821, %v1039_v25   ;;  %4185 = vst [vmem:[#allocation3_spill] sm:$0xff] %v3336_v0  ;;  %v1007_v22 = vadd.f32 %v988_v15, %v956_v11  ;;  %v3352_v19 = vsub.s32 %v317_v50, %v3012_v46 }
 0x18a   : > { %4186 = vst [vmem:[#allocation4_spill] sm:$0xff] %v3352_v19  ;;  %v3410_v56 = vpop.permute.xlu0 %991 }
 0x18c   : > { %1059 = vperm.xlu0 %2823, %v1036_v43   ;;  %2822 = vset.pattern.permute.xlu1 %v2902_v8  ;;  %v277_v31 = vpop.permute.xlu1 %276 }
 0x18d   : > { %1625 = vperm.xlu1 %2822, %v947_v49   ;;  %v298_v34 = vcombine.high %v277_v31, %v4157_v1  ;;  %v305_v42 = vrot.slane %v277_v31, %v3336_v0  ;;  %v957_v49 = vmul.f32 %v3123_v32, %v3184_v24 }
 0x18f   : > { %v312_v43 = vrot.slane %v298_v34, %v3336_v0  ;;  %v1008_v40 = vadd.f32 %v990_v41, %v957_v49 }
 0x190   : > { %1065 = vperm.xlu0 %2823, %v1038_v60   ;;  %v280_v62 = vpop.permute.xlu1 %279 }
 0x191   : > { %v282_v25 = vcombine.low %v3116_v30, %v280_v62  ;;  %v283_v45 = vcombine.high %v3116_v30, %v280_v62  ;;  %1735 = vperm.xlu1 %2822, %v1003_v38  }
 0x193   : > { %v290_v63 = vrot.slane %v282_v25, %v3336_v0  ;;  %v297_v33 = vrot.slane %v283_v45, %v3336_v0 }
 0x194   : > { %1071 = vperm.xlu0 %2823, %v1040_v57  }
 0x195   : > { %1741 = vperm.xlu1 %2822, %v1005_v4   ;;  %v313_v31 = vcombine.low %v290_v63, %v305_v42  ;;  %v329_v58 = vcombine.low %v297_v33, %v312_v43  ;;  %v314_v39 = vcombine.high %v290_v63, %v305_v42  ;;  %v330_v29 = vcombine.high %v297_v33, %v312_v43 }
 0x197   : > { %v3356_v60 = vrot.slane %v313_v31, %v3352_v19  ;;  %v3359_v38 = vrot.slane %v329_v58, %v3352_v19  ;;  %v3366_v24 = vrot.slane %v314_v39, %v3352_v19  ;;  %v3369_v41 = vrot.slane %v330_v29, %v3352_v19 }
 0x198   : > { %2824 = vset.pattern.permute.xlu0 %v2902_v8 }
 0x199   : > { %1750 = vperm.xlu0 %2824, %v1008_v40   ;;  %1747 = vperm.xlu1 %2822, %v1007_v22   ;;  %v3375_v27 = vcombine.high %v3356_v60, %v4157_v1  ;;  %v3384_v17 = vcombine.high %v3366_v24, %v4157_v1  ;;  %v3391_v34 = vcombine.high %v3359_v38, %v4157_v1 }
 0x19a   : > { %v3397_v62 = vcombine.high %v3369_v41, %v4157_v1 }
 0x19d   : > { %2827 = vset.pattern.permute.xlu0 %v2900_v2  ;;  %2825 = vset.pattern.permute.xlu1 %v4159_v3 }
 0x19e   : > { %1455 = vperm.xlu0 %2827, %v3359_v38   ;;  %1264 = vperm.xlu1 %2825, %v3356_v60  }
 0x1a2   : > { %1463 = vperm.xlu0 %2827, %v3369_v41   ;;  %1274 = vperm.xlu1 %2825, %v3366_v24  }
 0x1a6   : > { %1284 = vperm.xlu1 %2825, %v3359_v38   ;;  %1443 = vperm.xlu0 %2827, %v3375_v27  }
 0x1aa   : > { %1294 = vperm.xlu1 %2825, %v3369_v41   ;;  %2830 = vset.pattern.permute.xlu0 %v2902_v8 }
 0x1ab   : > { %1571 = vperm.xlu0 %2830, %v3375_v27  }
 0x1ae   : > { %2826 = vset.pattern.permute.xlu1 %v2900_v2 }
 0x1af   : > { %1439 = vperm.xlu1 %2826, %v3356_v60   ;;  %1579 = vperm.xlu0 %2830, %v3384_v17  }
 0x1b3   : > { %1447 = vperm.xlu1 %2826, %v3366_v24   ;;  %1587 = vperm.xlu0 %2830, %v3391_v34  }
 0x1b7   : > { %2828 = vset.pattern.permute.xlu1 %v2902_v8  ;;  %1595 = vperm.xlu0 %2830, %v3397_v62  }
 0x1b8   : > { %1567 = vperm.xlu1 %2828, %v3356_v60  }
 0x1bc   : > { %1575 = vperm.xlu1 %2828, %v3366_v24  }
 0x1c0   : > { %1583 = vperm.xlu1 %2828, %v3359_v38  }
 0x1c4   : > { %1591 = vperm.xlu1 %2828, %v3369_v41  }
 0x1c8   : > { %2829 = vset.pattern.permute.xlu1 %v2900_v2 }
 0x1c9   : > { %1451 = vperm.xlu1 %2829, %v3384_v17  }
 0x1cd   : > { %1459 = vperm.xlu1 %2829, %v3391_v34  }
 0x1d1   : > { %1467 = vperm.xlu1 %2829, %v3397_v62  }
 0x1d5   : > { %2831 = vset.pattern.permute.xlu1 %v2902_v8  ;;  %v3429_v8 = vand.u32 127, %v287_v5 }
 0x1d7   : > { %v3435_v11 = vsub.s32 %v3429_v8, %v3012_v46  ;;  %vm1015_vm10 = vcmp.eq.s32.totalorder %v3012_v46, %v3429_v8 }
 0x1ee   : > { %v3412_v25 = vpop.permute.xlu0 %1607  ;;  %v3414_v45 = vpop.permute.xlu1 %1610 }
 0x1f2   : > { %v3416_v57 = vpop.permute.xlu0 %1616  ;;  %v3418_v4 = vpop.permute.xlu1 %1613 }
 0x1f6   : > { %v3420_v50 = vpop.permute.xlu0 %1622  ;;  %v3422_v2 = vpop.permute.xlu1 %1619 }
 0x1fa   : > { %v3424_v15 = vpop.permute.xlu0 %1628 }
 0x1fb   : > { %v1054_v42 = vpop.permute.xlu1 %1053 }
 0x1fc   : > { %v1080_v22 = vrot.slane %v1054_v42, %v3435_v11 }
 0x1fe   : > { %v3426_v43 = vpop.permute.xlu0 %1738 }
 0x1ff   : > { %v1057_v33 = vpop.permute.xlu1 %1056 }
 0x200   : > { %v1084_v39 = vrot.slane %v1057_v33, %v3435_v11 }
 0x202   : > { %v3431_v63 = vpop.permute.xlu0 %1744 }
 0x203   : > { %4187 = vst [vmem:[#allocation5_spill] sm:$0xff] %v3431_v63  ;;  %v1063_v31 = vpop.permute.xlu1 %1062 }
 0x204   : > { %v1092_v30 = vrot.slane %v1063_v31, %v3435_v11 }
 0x207   : > { %v1051_v49 = vpop.permute.xlu0 %1050  ;;  %v1069_v0 = vpop.permute.xlu1 %1068 }
 0x208   : > { %v1076_v40 = vrot.slane %v1051_v49, %v3435_v11 }
 0x20a   : > { %v1106_v58 = vsel %vm1105_vm3, %v1080_v22, %v1076_v40  ;;  %v1100_v22 = vrot.slane %v1069_v0, %v3435_v11  ;;  %vm2236_vm3 = vcmask 31744  }
 0x20b   : > { %v1060_v5 = vpop.permute.xlu0 %1059  ;;  %v1108_v1 = vsel %vm1107_vm4, %v1084_v39, %v1106_v58  ;;  %vm2320_vm4 = vcmask 39936  }
 0x20c   : > { %v1088_v29 = vrot.slane %v1060_v5, %v3435_v11 }
 0x20e   : > { %v1110_v3 = vsel %vm1109_vm5, %v1088_v29, %v1108_v1  ;;  %vm2322_vm5 = vcmask 80896  }
 0x20f   : > { %v1066_v19 = vpop.permute.xlu0 %1065  ;;  %v1112_v49 = vsel %vm1111_vm6, %v1092_v30, %v1110_v3  ;;  %vm2324_vm6 = vcmask 121856  }
 0x210   : > { %v1096_v42 = vrot.slane %v1066_v19, %v3435_v11 }
 0x212   : > { %v1114_v63 = vsel %vm1113_vm7, %v1096_v42, %v1112_v49  ;;  %v958_v49 = vmul.f32 %v3123_v32, %v3302_v6 }
 0x213   : > { %v1072_v33 = vpop.permute.xlu0 %1071  ;;  %v1116_v40 = vsel %vm1115_vm8, %v1100_v22, %v1114_v63  ;;  %v3466_v22 = vpop.permute.xlu1 %1625 }
 0x214   : > { %v1104_v1 = vrot.slane %v1072_v33, %v3435_v11 }
 0x216   : > { %v1118_v58 = vsel %vm1117_vm9, %v1104_v1, %v1116_v40 }
 0x217   : > { %v1120_v31 = vsel %vm1015_vm10, 1.0, %v1118_v58 }
 0x218   : > { %2844 = vrsqrt.f32 %v1120_v31  ;;  %v3503_v40 = vpop.permute.xlu0 %1750 }
 0x222   : > { %v2845_v19 = vpop.eup %2844 }
 0x223   : > { %v3450_v3 = vmul.f32 %v2845_v19, %v1120_v31  ;;  %v1142_v30 = vrot.slane %v2845_v19, %v3018_v48  ;;  %v1135_v0 = vrot.slane %v2845_v19, %v3015_v47  ;;  %v1156_v39 = vrot.slane %v2845_v19, %v3029_v59  ;;  %v3507_v31 = vpop.permute.xlu0 %1455 }
 0x224   : > { %v1149_v5 = vrot.slane %v2845_v19, %v3025_v54  ;;  %v1170_v63 = vrot.slane %v2845_v19, %v3041_v7  ;;  %v1163_v29 = vrot.slane %v2845_v19, %v3034_v61  ;;  %v1184_v42 = vrot.slane %v2845_v19, %v3057_v21  ;;  %v3468_v61 = vpop.permute.xlu1 %1735  ;;  %4192 = vst [vmem:[#allocation8_spill] sm:$0xff] %v3507_v31 }
 0x225   : > { %1144 = vbcast.lane.b32.xlu1 %v1142_v30, 256  ;;  %1137 = vbcast.lane.b32.xlu0 %v1135_v0, 256  ;;  %v1177_v48 = vrot.slane %v2845_v19, %v3048_v14  ;;  %v959_v59 = vmul.f32 %v3123_v32, %v3210_v20  ;;  %v1009_v54 = vadd.f32 %v3410_v56, %v958_v49  ;;  %v4188_v21 = vmov 3  }
 0x226   : > { %v4166_v20 = vmov 4   ;;  %v4189_v56 = vmov 0  }
 0x227   : > { %v1010_v7 = vadd.f32 %v3313_v18, %v959_v59  ;;  %v3511_v30 = vpop.permute.xlu0 %1463 }
 0x228   : > { %v3476_v14 = vpop.permute.xlu1 %1741  ;;  %4193 = vst [vmem:[#allocation9_spill] sm:$0xff] %v3511_v30 }
 0x229   : > { %1158 = vbcast.lane.b32.xlu1 %v1156_v39, 256  ;;  %1151 = vbcast.lane.b32.xlu0 %v1149_v5, 256 }
 0x22b   : > { %v3515_v0 = vpop.permute.xlu0 %1443 }
 0x22c   : > { %v3480_v32 = vpop.permute.xlu1 %1747  ;;  %4194 = vst [vmem:[#allocation10_spill] sm:$0xff] %v3515_v0 }
 0x22d   : > { %1172 = vbcast.lane.b32.xlu1 %v1170_v63, 256  ;;  %1165 = vbcast.lane.b32.xlu0 %v1163_v29, 256 }
 0x22f   : > { %v3519_v5 = vpop.permute.xlu0 %1571 }
 0x230   : > { %v3486_v6 = vpop.permute.xlu1 %1264 }
 0x231   : > { %1186 = vbcast.lane.b32.xlu1 %v1184_v42, 256  ;;  %1179 = vbcast.lane.b32.xlu0 %v1177_v48, 256 }
 0x233   : > { %v3523_v29 = vpop.permute.xlu0 %1579 }
 0x234   : > { %v3492_v18 = vpop.permute.xlu1 %1274 }
 0x235   : > { %1753 = vperm.xlu1 %2831, %v1009_v54   ;;  %1756 = vperm.xlu0 %2830, %v1010_v7  }
 0x237   : > { %v3527_v48 = vpop.permute.xlu0 %1587 }
 0x238   : > { %v3496_v33 = vpop.permute.xlu1 %1284 }
 0x239   : > { %2832 = vset.pattern.permute.xlu1 %v4188_v21  ;;  %2833 = vset.pattern.permute.xlu0 %v4188_v21  ;;  %4190 = vst [vmem:[#allocation6_spill] sm:$0xff] %v3496_v33 }
 0x23a   : > { %1695 = vperm.xlu1 %2832, %v3356_v60   ;;  %1699 = vperm.xlu0 %2833, %v3375_v27  }
 0x23b   : > { %v3531_v59 = vpop.permute.xlu0 %1595 }
 0x23e   : > { %1703 = vperm.xlu1 %2832, %v3366_v24   ;;  %1711 = vperm.xlu0 %2833, %v3359_v38  }
 0x242   : > { %1707 = vperm.xlu1 %2832, %v3384_v17   ;;  %1719 = vperm.xlu0 %2833, %v3369_v41  }
 0x246   : > { %1715 = vperm.xlu1 %2832, %v3391_v34   ;;  %2834 = vset.pattern.permute.xlu0 %v4166_v20 }
 0x247   : > { %1873 = vperm.xlu0 %2834, %v3356_v60   ;;  %v3499_v60 = vpop.permute.xlu1 %1294 }
 0x248   : > { %4191 = vst [vmem:[#allocation7_spill] sm:$0xff] %v3499_v60 }
 0x24a   : > { %1723 = vperm.xlu1 %2832, %v3397_v62  }
 0x24b   : > { %1885 = vperm.xlu0 %2834, %v3384_v17   ;;  %v3501_v1 = vpop.permute.xlu1 %1439 }
 0x24e   : > { %2835 = vset.pattern.permute.xlu1 %v4166_v20 }
 0x24f   : > { %1877 = vperm.xlu1 %2835, %v3375_v27   ;;  %1893 = vperm.xlu0 %2834, %v3391_v34   ;;  %v3505_v58 = vpop.permute.xlu1 %1447 }
 0x253   : > { %1881 = vperm.xlu1 %2835, %v3366_v24   ;;  %2838 = vset.pattern.permute.xlu0 %v4189_v56  ;;  %v3509_v19 = vpop.permute.xlu1 %1567 }
 0x257   : > { %2836 = vset.pattern.permute.xlu1 %v4189_v56  ;;  %v3513_v24 = vpop.permute.xlu1 %1575 }
 0x25b   : > { %v3517_v39 = vpop.permute.xlu1 %1583 }
 0x25f   : > { %v3521_v63 = vpop.permute.xlu1 %1591 }
 0x263   : > { %v3525_v42 = vpop.permute.xlu1 %1451 }
 0x264   : > { %4195 = vst [vmem:[#allocation11_spill] sm:$0xff] %v3525_v42 }
 0x267   : > { %v3529_v49 = vpop.permute.xlu1 %1459 }
 0x268   : > { %4196 = vst [vmem:[#allocation12_spill] sm:$0xff] %v3529_v49 }
 0x26b   : > { %v3533_v54 = vpop.permute.xlu1 %1467 }
 0x26c   : > { %4197 = vst [vmem:[#allocation13_spill] sm:$0xff] %v3533_v54 }
 0x297   : > { %v1138_v7 = vpop.permute.xlu0 %1137  ;;  %v1145_v21 = vpop.permute.xlu1 %1144 }
 0x298   : > { %v1196_v56 = vmul.f32 %v1138_v7, %v3273_v36  ;;  %v1197_v20 = vmul.f32 %v1145_v21, %v3212_v26 }
 0x29a   : > { %1311 = vperm.xlu0 %2838, %v1196_v56   ;;  %1314 = vperm.xlu1 %2836, %v1197_v20  }
 0x29b   : > { %v1152_v30 = vpop.permute.xlu0 %1151  ;;  %v1159_v0 = vpop.permute.xlu1 %1158 }
 0x29c   : > { %v1198_v42 = vmul.f32 %v1152_v30, %v3217_v44  ;;  %v1199_v60 = vmul.f32 %v1159_v0, %v3279_v51  ;;  %v1204_v44 = vmul.f32 %v1138_v7, %v3256_v9  ;;  %v1206_v51 = vmul.f32 %v1152_v30, %v3219_v52 }
 0x29d   : > { %v1205_v9 = vmul.f32 %v1145_v21, %v3201_v10  ;;  %v1207_v52 = vmul.f32 %v1159_v0, %v3282_v37  ;;  %v2697_v37 = vadd.f32 -0.2, %v3450_v3  ;;  %v2919_v21 = vmov 1966171168  }
 0x29e   : > { %1317 = vperm.xlu1 %2836, %v1198_v42   ;;  %1320 = vperm.xlu0 %2838, %v1199_v60  }
 0x29f   : > { %v1166_v49 = vpop.permute.xlu0 %1165  ;;  %v1173_v31 = vpop.permute.xlu1 %1172 }
 0x2a0   : > { %v1200_v54 = vmul.f32 %v1166_v49, %v3240_v23  ;;  %v1201_v33 = vmul.f32 %v1173_v31, %v3305_v13  ;;  %v1208_v23 = vmul.f32 %v1166_v49, %v3243_v55  ;;  %v4198_v13 = vmov 4  }
 0x2a1   : > { %v1209_v55 = vmul.f32 %v1173_v31, %v3308_v53  ;;  %v1124_v53 = vmul.f32 5.0, %v2697_v37 }
 0x2a2   : > { %1323 = vperm.xlu1 %2836, %v1200_v54   ;;  %1326 = vperm.xlu0 %2838, %v1201_v33  }
 0x2a3   : > { %v1180_v36 = vpop.permute.xlu0 %1179  ;;  %v1187_v26 = vpop.permute.xlu1 %1186 }
 0x2a4   : > { %v1202_v20 = vmul.f32 %v1180_v36, %v3263_v28  ;;  %v1203_v56 = vmul.f32 %v1187_v26, %v3322_v35  ;;  %v1210_v28 = vmul.f32 %v1180_v36, %v3266_v16  ;;  %v1211_v16 = vmul.f32 %v1187_v26, %v3325_v12 }
 0x2a5   : > { %v1215_v36 = vunpack.c.l.s4 %v2919_v21  ;;  %v3627_v21 = vrot.slane %v3414_v45, %v3435_v11  ;;  %v3647_v45 = vrot.slane %v3424_v15, %v3435_v11 }
 0x2a6   : > { %1329 = vperm.xlu1 %2836, %v1202_v20   ;;  %1332 = vperm.xlu0 %2838, %v1203_v56  }
 0x2a7   : > { %v1216_v56 = vunpack.c.0.s8 %v1215_v36  ;;  %4204 = vst [vmem:[#allocation18_spill] sm:$0xff] %v3627_v21  ;;  %v3631_v36 = vrot.slane %v3416_v57, %v3435_v11  ;;  %4209 = vst [vmem:[#allocation23_spill] sm:$0xff] %v3647_v45 }
 0x2a9   : > { %4205 = vst [vmem:[#allocation19_spill] sm:$0xff] %v3631_v36 }
 0x2aa   : > { %1479 = vperm.xlu1 %2836, %v1204_v44   ;;  %1269 = vperm.xlu0 %2838, %v3375_v27   ;;  %v4201_v44 = vmov 0.0  }
 0x2ae   : > { %1485 = vperm.xlu1 %2836, %v1206_v51   ;;  %1279 = vperm.xlu0 %2838, %v3384_v17   ;;  %v1016_v51 = vsel %vm1015_vm10, -1e+30, %v4201_v44 }
 0x2b2   : > { %1491 = vperm.xlu1 %2836, %v1208_v23   ;;  %1289 = vperm.xlu0 %2838, %v3391_v34   ;;  %v2698_v34 = vadd.f32 -1.0, %v1124_v53 }
 0x2b4   : > { %v3560_v10 = vpop.permute.xlu1 %1753  ;;  %v3562_v35 = vpop.permute.xlu0 %1756  ;;  %v1126_v33 = vmul.f32 1.442695, %v2698_v34 }
 0x2b6   : > { %1497 = vperm.xlu1 %2836, %v1210_v28   ;;  %1299 = vperm.xlu0 %2838, %v3397_v62   ;;  %2846 = vpow2.f32 %v1126_v33 }
 0x2b9   : > { %v3567_v27 = vpop.permute.xlu0 %1699 }
 0x2ba   : > { %2837 = vset.pattern.permute.xlu1 %v4198_v13  ;;  %1482 = vperm.xlu0 %2838, %v1205_v9   ;;  %v3600_v9 = vsub.s32 %v1216_v56, %v3012_v46  ;;  %v3639_v56 = vrot.slane %v3420_v50, %v3435_v11  ;;  %v4210_v50 = vld [vmem:[#allocation5_spill] sm:$0xff] }
 0x2bb   : > { %1889 = vperm.xlu1 %2837, %v3359_v38   ;;  %v3564_v38 = vpop.permute.xlu1 %1695 }
 0x2bc   : > { %4207 = vst [vmem:[#allocation21_spill] sm:$0xff] %v3639_v56 }
 0x2bd   : > { %v3571_v17 = vpop.permute.xlu0 %1711 }
 0x2be   : > { %1488 = vperm.xlu0 %2838, %v1207_v52  }
 0x2bf   : > { %1897 = vperm.xlu1 %2837, %v3369_v41   ;;  %v3569_v41 = vpop.permute.xlu1 %1703 }
 0x2c0   : > { %v2847_v42 = vpop.eup %2846 }
 0x2c1   : > { %v1128_v49 = vadd.f32 1.0, %v2847_v42  ;;  %v3623_v42 = vrot.slane %v3412_v25, %v3435_v11  ;;  %v3643_v25 = vrot.slane %v3422_v2, %v3435_v11 }
 0x2c2   : > { %1494 = vperm.xlu0 %2838, %v1209_v55  }
 0x2c3   : > { %v3573_v12 = vpop.permute.xlu1 %1707  ;;  %2848 = vrcp.f32 %v1128_v49  ;;  %4203 = vst [vmem:[#allocation17_spill] sm:$0xff] %v3623_v42  ;;  %v1213_v49 = vcombine.high %v1016_v51, %v1016_v51  ;;  %4208 = vst [vmem:[#allocation22_spill] sm:$0xff] %v3643_v25 }
 0x2c6   : > { %1500 = vperm.xlu0 %2838, %v1211_v16  }
 0x2c7   : > { %v3577_v60 = vpop.permute.xlu1 %1715 }
 0x2ca   : > { %2839 = vset.pattern.permute.xlu0 %v4198_v13  ;;  %v3603_v13 = vrot.slane %v1016_v51, %v3600_v9 }
 0x2cb   : > { %1901 = vperm.xlu0 %2839, %v3397_v62   ;;  %v3575_v62 = vpop.permute.xlu0 %1719  ;;  %v3581_v30 = vpop.permute.xlu1 %1723 }
 0x2cc   : > { %4199 = vst [vmem:[#allocation14_spill] sm:$0xff] %v3581_v30  ;;  %v3611_v37 = vrot.slane %v3603_v13, %v3600_v9 }
 0x2cd   : > { %v2849_v16 = vpop.eup %2848 }
 0x2ce   : > { %v1830_v53 = vrot.slane %v2849_v16, %v3600_v9  ;;  %v1823_v34 = vcombine.high %v2849_v16, %v2849_v16  ;;  %v1393_v57 = vrot.slane %v3611_v37, %v3015_v47  ;;  %v3659_v16 = vrot.slane %v4210_v50, %v3435_v11 }
 0x2cf   : > { %v3579_v31 = vpop.permute.xlu0 %1873  ;;  %v3585_v0 = vpop.permute.xlu1 %1877 }
 0x2d0   : > { %v1838_v2 = vcombine.high %v1830_v53, %v1830_v53  ;;  %v1837_v44 = vrot.slane %v1823_v34, %v3600_v9  ;;  %v3681_v34 = vrot.slane %v3503_v40, %v3435_v11 }
 0x2d2   : > { %4214 = vst [vmem:[#allocation26_spill] sm:$0xff] %v3681_v34 }
 0x2d3   : > { %v3583_v3 = vpop.permute.xlu0 %1885  ;;  %v3589_v7 = vpop.permute.xlu1 %1881 }
 0x2d7   : > { %v3587_v54 = vpop.permute.xlu0 %1893 }
 0x2d8   : > { %4200 = vst [vmem:[#allocation15_spill] sm:$0xff] %v3587_v54  ;;  %v3666_v54 = vrot.slane %v3466_v22, %v3435_v11  ;;  %v3689_v22 = vmul.f32 %v3627_v21, %v3519_v5  ;;  %v1678_v5 = vmul.f32 %v3623_v42, %v3509_v19  ;;  %v1839_v21 = vcombine.high %v1837_v44, %v1837_v44  ;;  %v4220_v42 = vld [vmem:[#allocation8_spill] sm:$0xff] }
 0x2da   : > { %4211 = vst [vmem:[#allocation5_spill] sm:$0xff] %v3666_v54 }
 0x319   : > { %v1312_v26 = vpop.permute.xlu0 %1311  ;;  %v3591_v20 = vpop.permute.xlu1 %1314 }
 0x31a   : > { %v3614_v8 = vrot.slane %v1312_v26, %v3435_v11  ;;  %v3635_v26 = vrot.slane %v3418_v4, %v3435_v11  ;;  %v3655_v4 = vrot.slane %v3426_v43, %v3435_v11  ;;  %v3674_v43 = vrot.slane %v3476_v14, %v3435_v11 }
 0x31b   : > { %v3694_v14 = vmul.f32 %v3631_v36, %v3523_v29 }
 0x31c   : > { %4202 = vst [vmem:[#allocation16_spill] sm:$0xff] %v3614_v8  ;;  %4206 = vst [vmem:[#allocation20_spill] sm:$0xff] %v3635_v26  ;;  %v1382_v51 = vmul.f32 %v3614_v8, %v3486_v6  ;;  %v3670_v6 = vrot.slane %v3468_v61, %v3435_v11  ;;  %v3685_v8 = vrot.slane %v3480_v32, %v3435_v11 }
 0x31d   : > { %v3597_v23 = vpop.permute.xlu0 %1320  ;;  %v1318_v28 = vpop.permute.xlu1 %1317  ;;  %v1846_v61 = vrot.slane %v1830_v53, %v3600_v9  ;;  %v3704_v32 = vmul.f32 %v3647_v45, %v3531_v59  ;;  %v1860_v53 = vrot.slane %v1838_v2, %v3600_v9  ;;  %v1227_v59 = vrot.slane %v1213_v49, %v3600_v9 }
 0x31e   : > { %4212 = vst [vmem:[#allocation24_spill] sm:$0xff] %v3670_v6  ;;  %v1430_v40 = vadd.f32 %v1393_v57, %v1382_v51  ;;  %v1258_v2 = vcombine.high %v3611_v37, %v3611_v37  ;;  %v3726_v45 = vrot.slane %v1318_v28, %v3435_v11  ;;  %v3733_v49 = vrot.slane %v1837_v44, %v3600_v9 }
 0x31f   : > { %v3721_v51 = vrot.slane %v1846_v61, %v3015_v47  ;;  %v1868_v19 = vcombine.high %v1846_v61, %v1846_v61  ;;  %v1870_v61 = vcombine.high %v1860_v53, %v1860_v53  ;;  %v3740_v37 = vrot.slane %v1839_v21, %v3600_v9 }
 0x320   : > { %v1243_v44 = vrot.slane %v1227_v59, %v3600_v9  ;;  %v1384_v21 = vmul.f32 %v3726_v45, %v3492_v18  ;;  %v1229_v18 = vcombine.high %v1227_v59, %v1227_v59 }
 0x321   : > { %v3605_v52 = vpop.permute.xlu0 %1326  ;;  %v3607_v55 = vpop.permute.xlu1 %1323  ;;  %4215 = vst [vmem:[#allocation27_spill] sm:$0xff] %v3721_v51 }
 0x325   : > { %v3617_v46 = vpop.permute.xlu0 %1332  ;;  %v3619_v33 = vpop.permute.xlu1 %1329 }
 0x329   : > { %v3662_v30 = vpop.permute.xlu0 %1269  ;;  %v1480_v15 = vpop.permute.xlu1 %1479 }
 0x32a   : > { %v3677_v50 = vrot.slane %v1480_v15, %v3435_v11  ;;  %v3698_v15 = vmul.f32 %v3639_v56, %v3527_v48  ;;  %v3713_v48 = vmul.f32 %v3635_v26, %v3513_v24  ;;  %v1806_v24 = vmul.f32 %v3670_v6, %v3564_v38 }
 0x32b   : > { %v3759_v6 = vrot.slane %v1868_v19, %v3015_v47 }
 0x32c   : > { %4213 = vst [vmem:[#allocation25_spill] sm:$0xff] %v3677_v50  ;;  %v1550_v34 = vmul.f32 %v3677_v50, %v3501_v1  ;;  %v3717_v1 = vmul.f32 %v3643_v25, %v3517_v39  ;;  %v1228_v39 = vcombine.high %v3603_v13, %v3603_v13  ;;  %v1944_v13 = vmul.f32 %v3721_v51, %v3579_v31 }
 0x32d   : > { %v3709_v29 = vpop.permute.xlu0 %1279  ;;  %v1486_v36 = vpop.permute.xlu1 %1485  ;;  %v3788_v25 = vrot.slane %v3619_v33, %v3435_v11 }
 0x32e   : > { %v1558_v57 = vadd.f32 %v1550_v34, %v1430_v40  ;;  %v3737_v34 = vmul.f32 %v3666_v54, %v3521_v63  ;;  %v3743_v28 = vrot.slane %v1486_v36, %v3435_v11  ;;  %v1401_v63 = vrot.slane %v1258_v2, %v3015_v47  ;;  %v4218_v54 = vld [vmem:[#allocation6_spill] sm:$0xff] }
 0x32f   : > { %v3756_v36 = vrot.slane %v3607_v55, %v3435_v11  ;;  %v1250_v31 = vrot.slane %v1228_v39, %v3600_v9  ;;  %v3779_v39 = vrot.slane %v3591_v20, %v3435_v11  ;;  %4219 = vst [vmem:[#allocation6_spill] sm:$0xff] %v3788_v25  ;;  %v3791_v20 = vrot.slane %v1870_v61, %v3015_v47 }
 0x330   : > { %v1686_v56 = vadd.f32 %v1678_v5, %v1558_v57  ;;  %4216 = vst [vmem:[#allocation28_spill] sm:$0xff] %v3743_v28  ;;  %v3748_v5 = vrot.slane %v1860_v53, %v3015_v47  ;;  %v1552_v2 = vmul.f32 %v3743_v28, %v3505_v58  ;;  %v1432_v59 = vadd.f32 %v1401_v63, %v1384_v21 }
 0x331   : > { %v1290_v40 = vpop.permute.xlu0 %1289  ;;  %v1492_v38 = vpop.permute.xlu1 %1491  ;;  %v1260_v19 = vcombine.high %v1250_v31, %v1250_v31  ;;  %v1397_v26 = vrot.slane %v1250_v31, %v3015_v47  ;;  %v1383_v63 = vmul.f32 %v3779_v39, %v3662_v30  ;;  %v3808_v28 = vrot.slane %v3597_v23, %v3435_v11 }
 0x332   : > { %v1814_v57 = vadd.f32 %v1806_v24, %v1686_v56  ;;  %v3766_v56 = vrot.slane %v3733_v49, %v3015_v47  ;;  %v3771_v24 = vrot.slane %v1492_v38, %v3435_v11  ;;  %v1386_v38 = vmul.f32 %v3756_v36, %v4218_v54 }
 0x333   : > { %v1560_v21 = vadd.f32 %v1552_v2, %v1432_v59  ;;  %v1257_v54 = vrot.slane %v1229_v18, %v3600_v9  ;;  %v4221_v2 = vld [vmem:[#allocation7_spill] sm:$0xff]  ;;  %v3821_v59 = vrot.slane %v3560_v10, %v3435_v11  ;;  %v1431_v23 = vadd.f32 %v1397_v26, %v1383_v63 }
 0x334   : > { %v3762_v53 = vadd.f32 %v1944_v13, %v1814_v57  ;;  %4217 = vst [vmem:[#allocation29_spill] sm:$0xff] %v3771_v24  ;;  %v1409_v13 = vrot.slane %v1243_v44, %v3015_v47  ;;  %v1259_v57 = vcombine.high %v1243_v44, %v1243_v44  ;;  %v3795_v44 = vrot.slane %v3740_v37, %v3015_v47 }
 0x335   : > { %v3773_v55 = vpop.permute.xlu0 %1299  ;;  %v1498_v51 = vpop.permute.xlu1 %1497  ;;  %v1554_v33 = vmul.f32 %v3771_v24, %v4220_v42  ;;  %v1388_v42 = vmul.f32 %v3788_v25, %v4221_v2  ;;  %v1261_v18 = vcombine.high %v1257_v54, %v1257_v54  ;;  %v1807_v10 = vmul.f32 %v3655_v4, %v3567_v27 }
 0x336   : > { %v1961_v58 = vsel %vm1960_vm11, %v3762_v53, -inf  ;;  %v1417_v50 = vrot.slane %v1259_v57, %v3015_v47  ;;  %v1434_v9 = vadd.f32 %v1409_v13, %v1386_v38  ;;  %v1385_v57 = vmul.f32 %v3808_v28, %v3709_v29 }
 0x337   : > { %1962 = vmax.xlane.f32.xlu1 %v1961_v58  ;;  %v3804_v58 = vrot.slane %v1498_v51, %v3435_v11  ;;  %v1405_v51 = vrot.slane %v1260_v19, %v3015_v47  ;;  %v3829_v13 = vrot.slane %v3605_v52, %v3435_v11  ;;  %v1688_v38 = vadd.f32 %v3713_v48, %v1560_v21  ;;  %v4223_v19 = vld [vmem:[#allocation9_spill] sm:$0xff] }
 0x338   : > { %v1562_v2 = vadd.f32 %v1554_v33, %v1434_v9  ;;  %v1413_v26 = vrot.slane %v1257_v54, %v3015_v47  ;;  %v1808_v52 = vmul.f32 %v3674_v43, %v3569_v41  ;;  %v1421_v21 = vrot.slane %v1261_v18, %v3015_v47 }
 0x339   : > { %v1483_v61 = vpop.permute.xlu0 %1482  ;;  %v1556_v30 = vmul.f32 %v3804_v58, %v4223_v19  ;;  %v1387_v48 = vmul.f32 %v3829_v13, %v1290_v40  ;;  %v1810_v33 = vmul.f32 %v3685_v8, %v3571_v17  ;;  %v1433_v9 = vadd.f32 %v1405_v51, %v1385_v57  ;;  %v4224_v19 = vld [vmem:[#allocation11_spill] sm:$0xff] }
 0x33a   : > { %v3812_v31 = vrot.slane %v1483_v61, %v3435_v11  ;;  %v4222_v61 = vld [vmem:[#allocation10_spill] sm:$0xff]  ;;  %v1690_v41 = vadd.f32 %v3717_v1, %v1562_v2  ;;  %v1816_v40 = vadd.f32 %v1808_v52, %v1688_v38  ;;  %v3854_v18 = vrot.slane %v3617_v46, %v3435_v11  ;;  %v4225_v38 = vld [vmem:[#allocation12_spill] sm:$0xff] }
 0x33b   : > { %v1946_v1 = vmul.f32 %v3759_v6, %v3589_v7 }
 0x33c   : > { %v1551_v24 = vmul.f32 %v3812_v31, %v4222_v61  ;;  %v1436_v61 = vadd.f32 %v1417_v50, %v1388_v42  ;;  %v1890_v50 = vpop.permute.xlu1 %1889  ;;  %v1389_v57 = vmul.f32 %v3854_v18, %v3773_v55 }
 0x33d   : > { %v1489_v25 = vpop.permute.xlu0 %1488  ;;  %v1948_v52 = vmul.f32 %v3766_v56, %v1890_v50  ;;  %v4229_v50 = vld [vmem:[#allocation15_spill] sm:$0xff] }
 0x33e   : > { %v1559_v29 = vadd.f32 %v1551_v24, %v1431_v23  ;;  %v3838_v63 = vrot.slane %v1489_v25, %v3435_v11  ;;  %v1945_v25 = vmul.f32 %v3748_v5, %v3585_v0  ;;  %v1564_v54 = vadd.f32 %v1556_v30, %v1436_v61 }
 0x33f   : > { %v1809_v23 = vmul.f32 %v3659_v16, %v3573_v12  ;;  %v1947_v0 = vmul.f32 %v3791_v20, %v3583_v3  ;;  %v1435_v30 = vadd.f32 %v1413_v26, %v1387_v48  ;;  %v1954_v3 = vadd.f32 %v1946_v1, %v1816_v40 }
 0x340   : > { %v1687_v27 = vadd.f32 %v3689_v22, %v1559_v29  ;;  %v1553_v24 = vmul.f32 %v3838_v63, %v4224_v19  ;;  %v1692_v12 = vadd.f32 %v3737_v34, %v1564_v54  ;;  %v1812_v48 = vmul.f32 %v3821_v59, %v3575_v62 }
 0x341   : > { %v1495_v42 = vpop.permute.xlu0 %1494  ;;  %v4227_v34 = vcombine.high %v3733_v49, %v3733_v49  ;;  %v1949_v62 = vmul.f32 %v3795_v44, %v4229_v50  ;;  %v1967_v40 = vsel %vm1960_vm11, %v1954_v3, -inf }
 0x342   : > { %v1561_v17 = vadd.f32 %v1553_v24, %v1433_v9  ;;  %v3857_v51 = vrot.slane %v1495_v42, %v3435_v11  ;;  %v1815_v22 = vadd.f32 %v1807_v10, %v1687_v27  ;;  %v1818_v10 = vadd.f32 %v1810_v33, %v1690_v41  ;;  %v4226_v33 = vld [vmem:[#allocation26_spill] sm:$0xff]  ;;  %v1898_v24 = vpop.permute.xlu1 %1897  ;;  %v4228_v41 = vld [vmem:[#allocation13_spill] sm:$0xff] }
 0x343   : > { %v1811_v27 = vmul.f32 %v4226_v33, %v3577_v60  ;;  %v3888_v19 = vrot.slane %v4227_v34, %v3015_v47  ;;  %v1820_v60 = vadd.f32 %v1812_v48, %v1692_v12 }
 0x344   : > { %v1689_v46 = vadd.f32 %v3694_v14, %v1561_v17  ;;  %v1555_v2 = vmul.f32 %v3857_v51, %v4225_v38  ;;  %v1953_v29 = vadd.f32 %v1945_v25, %v1815_v22  ;;  %v3878_v14 = vrot.slane %v3562_v35, %v3435_v11 }
 0x345   : > { %v1501_v61 = vpop.permute.xlu0 %1500  ;;  %v1437_v25 = vadd.f32 %v1421_v21, %v1389_v57  ;;  %v1956_v42 = vadd.f32 %v1948_v52, %v1818_v10  ;;  %v1950_v49 = vmul.f32 %v3888_v19, %v1898_v24 }
 0x346   : > { %v1563_v9 = vadd.f32 %v1555_v2, %v1435_v30  ;;  %v3873_v7 = vrot.slane %v1501_v61, %v3435_v11  ;;  %v1964_v26 = vsel %vm1960_vm11, %v1953_v29, -inf  ;;  %v1817_v55 = vadd.f32 %v1809_v23, %v1689_v46 }
 0x347   : > { %1965 = vmax.xlane.f32.xlu0 %v1964_v26  ;;  %v4231_v30 = vcombine.high %v3740_v37, %v3740_v37  ;;  %v1973_v38 = vsel %vm1960_vm11, %v1956_v42, -inf  ;;  %v1958_v2 = vadd.f32 %v1950_v49, %v1820_v60 }
 0x348   : > { %v1691_v54 = vadd.f32 %v3698_v15, %v1563_v9  ;;  %v1557_v11 = vmul.f32 %v3873_v7, %v4228_v41  ;;  %v1955_v35 = vadd.f32 %v1947_v0, %v1817_v55  ;;  %v4230_v15 = vld [vmem:[#allocation14_spill] sm:$0xff] }
 0x349   : > { %v1813_v1 = vmul.f32 %v3878_v14, %v4230_v15  ;;  %v3905_v57 = vrot.slane %v4231_v30, %v3015_v47  ;;  %v1979_v9 = vsel %vm1960_vm11, %v1958_v2, -inf }
 0x34a   : > { %v1565_v17 = vadd.f32 %v1557_v11, %v1437_v25  ;;  %v1970_v22 = vsel %vm1960_vm11, %v1955_v35, -inf  ;;  %v1819_v23 = vadd.f32 %v1811_v27, %v1691_v54  ;;  %v1902_v21 = vpop.permute.xlu0 %1901 }
 0x34b   : > { %1971 = vmax.xlane.f32.xlu1 %v1970_v22  ;;  %1968 = vmax.xlane.f32.xlu0 %v1967_v40  ;;  %v1951_v52 = vmul.f32 %v3905_v57, %v1902_v21 }
 0x34c   : > { %v1693_v0 = vadd.f32 %v3704_v32, %v1565_v17  ;;  %v1957_v46 = vadd.f32 %v1949_v62, %v1819_v23 }
 0x34e   : > { %v1821_v10 = vadd.f32 %v1813_v1, %v1693_v0  ;;  %v1976_v12 = vsel %vm1960_vm11, %v1957_v46, -inf }
 0x34f   : > { %1977 = vmax.xlane.f32.xlu1 %v1976_v12  ;;  %1974 = vmax.xlane.f32.xlu0 %v1973_v38 }
 0x350   : > { %v1959_v61 = vadd.f32 %v1951_v52, %v1821_v10 }
 0x352   : > { %v1982_v32 = vsel %vm1960_vm11, %v1959_v61, -inf }
 0x353   : > { %1983 = vmax.xlane.f32.xlu1 %v1982_v32  ;;  %1980 = vmax.xlane.f32.xlu0 %v1979_v9 }
 0x3c4   : > { %v1963_v47 = vpop.xlane.xlu1 %1962 }
 0x3c5   : > { %v1985_v37 = vsub.f32 %v3762_v53, %v1963_v47 }
 0x3c7   : > { %v1993_v26 = vmul.f32 1.442695, %v1985_v37 }
 0x3c9   : > { %2850 = vpow2.f32 %v1993_v26 }
 0x3d3   : > { %v2851_v55 = vpop.eup %2850 }
 0x3d4   : > { %v1966_v48 = vpop.xlane.xlu0 %1965  ;;  %v2009_v27 = vsel %vm1960_vm11, %v2851_v55, 0.0 }
 0x3d5   : > { %v1986_v34 = vsub.f32 %v1953_v29, %v1966_v48  ;;  %2010 = vadd.xlane.f32.xlu0 %v2009_v27  ;;  %v4232_v27 = vld [vmem:[#allocation16_spill] sm:$0xff] }
 0x3d7   : > { %v1995_v24 = vmul.f32 1.442695, %v1986_v34 }
 0x3d8   : > { %v1969_v25 = vpop.xlane.xlu0 %1968  ;;  %v1972_v54 = vpop.xlane.xlu1 %1971 }
 0x3d9   : > { %2852 = vpow2.f32 %v1995_v24  ;;  %v1987_v41 = vsub.f32 %v1954_v3, %v1969_v25  ;;  %v1988_v11 = vsub.f32 %v1955_v35, %v1972_v54 }
 0x3db   : > { %v1997_v50 = vmul.f32 1.442695, %v1987_v41  ;;  %v1999_v62 = vmul.f32 1.442695, %v1988_v11 }
 0x3dc   : > { %v1975_v60 = vpop.xlane.xlu0 %1974  ;;  %v1978_v40 = vpop.xlane.xlu1 %1977 }
 0x3dd   : > { %2854 = vpow2.f32 %v1997_v50  ;;  %v1989_v53 = vsub.f32 %v1956_v42, %v1975_v60  ;;  %v1990_v49 = vsub.f32 %v1957_v46, %v1978_v40 }
 0x3de   : > { %2856 = vpow2.f32 %v1999_v62 }
 0x3df   : > { %v2001_v17 = vmul.f32 1.442695, %v1989_v53  ;;  %v2003_v22 = vmul.f32 1.442695, %v1990_v49 }
 0x3e0   : > { %v1981_v23 = vpop.xlane.xlu0 %1980  ;;  %v1984_v21 = vpop.xlane.xlu1 %1983 }
 0x3e1   : > { %2858 = vpow2.f32 %v2001_v17  ;;  %v1991_v29 = vsub.f32 %v1958_v2, %v1981_v23  ;;  %v1992_v15 = vsub.f32 %v1959_v61, %v1984_v21 }
 0x3e2   : > { %2860 = vpow2.f32 %v2003_v22 }
 0x3e3   : > { %v2853_v1 = vpop.eup %2852  ;;  %v2005_v0 = vmul.f32 1.442695, %v1991_v29  ;;  %v2007_v3 = vmul.f32 1.442695, %v1992_v15 }
 0x3e4   : > { %v2012_v35 = vsel %vm1960_vm11, %v2853_v1, 0.0 }
 0x3e5   : > { %2862 = vpow2.f32 %v2005_v0  ;;  %2013 = vadd.xlane.f32.xlu1 %v2012_v35 }
 0x3e6   : > { %2864 = vpow2.f32 %v2007_v3 }
 0x3e7   : > { %v2855_v30 = vpop.eup %2854 }
 0x3e8   : > { %v2857_v42 = vpop.eup %2856  ;;  %v2015_v46 = vsel %vm1960_vm11, %v2855_v30, 0.0 }
 0x3e9   : > { %2016 = vadd.xlane.f32.xlu0 %v2015_v46  ;;  %v2018_v38 = vsel %vm1960_vm11, %v2857_v42, 0.0 }
 0x3ea   : > { %2019 = vadd.xlane.f32.xlu1 %v2018_v38 }
 0x3eb   : > { %v2859_v10 = vpop.eup %2858 }
 0x3ec   : > { %v2861_v2 = vpop.eup %2860  ;;  %v2021_v52 = vsel %vm1960_vm11, %v2859_v10, 0.0 }
 0x3ed   : > { %2022 = vadd.xlane.f32.xlu0 %v2021_v52  ;;  %v2024_v12 = vsel %vm1960_vm11, %v2861_v2, 0.0 }
 0x3ee   : > { %2025 = vadd.xlane.f32.xlu1 %v2024_v12  ;;  %v4233_v12 = vld [vmem:[#allocation6_spill] sm:$0xff] }
 0x3ef   : > { %v2863_v61 = vpop.eup %2862 }
 0x3f0   : > { %v2865_v32 = vpop.eup %2864  ;;  %v2027_v9 = vsel %vm1960_vm11, %v2863_v61, 0.0 }
 0x3f1   : > { %2028 = vadd.xlane.f32.xlu0 %v2027_v9  ;;  %v2030_v47 = vsel %vm1960_vm11, %v2865_v32, 0.0 }
 0x3f2   : > { %2031 = vadd.xlane.f32.xlu1 %v2030_v47 }
 0x462   : > { %v2011_v37 = vpop.xlane.xlu0 %2010 }
 0x463   : > { %2866 = vrcp.f32 %v2011_v37 }
 0x46d   : > { %v2867_v26 = vpop.eup %2866 }
 0x46e   : > { %v3921_v48 = vmul.f32 %v2867_v26, %v2851_v55 }
 0x470   : > { %v2049_v34 = vmul.f32 %v3921_v48, %v4232_v27  ;;  %v4235_v27 = vld [vmem:[#allocation28_spill] sm:$0xff] }
 0x472   : > { %v2014_v24 = vpop.xlane.xlu1 %2013  ;;  %v2057_v25 = vsel %vm1960_vm11, %v2049_v34, 0.0 }
 0x473   : > { %2868 = vrcp.f32 %v2014_v24  ;;  %2058 = vadd.xlane.f32.xlu0 %v2057_v25 }
 0x476   : > { %v2017_v54 = vpop.xlane.xlu0 %2016 }
 0x477   : > { %2870 = vrcp.f32 %v2017_v54  ;;  %v2020_v41 = vpop.xlane.xlu1 %2019  ;;  %v4236_v54 = vld [vmem:[#allocation29_spill] sm:$0xff] }
 0x478   : > { %2872 = vrcp.f32 %v2020_v41 }
 0x47a   : > { %v2023_v11 = vpop.xlane.xlu0 %2022 }
 0x47b   : > { %2874 = vrcp.f32 %v2023_v11  ;;  %v2026_v50 = vpop.xlane.xlu1 %2025 }
 0x47c   : > { %2876 = vrcp.f32 %v2026_v50 }
 0x47d   : > { %v2869_v62 = vpop.eup %2868 }
 0x47e   : > { %v3926_v60 = vmul.f32 %v2869_v62, %v2853_v1  ;;  %v2029_v55 = vpop.xlane.xlu0 %2028 }
 0x47f   : > { %2878 = vrcp.f32 %v2029_v55  ;;  %v2032_v40 = vpop.xlane.xlu1 %2031 }
 0x480   : > { %2880 = vrcp.f32 %v2032_v40  ;;  %v2050_v53 = vmul.f32 %v3926_v60, %v3779_v39 }
 0x481   : > { %v2871_v49 = vpop.eup %2870 }
 0x482   : > { %v2873_v17 = vpop.eup %2872  ;;  %v3930_v22 = vmul.f32 %v2871_v49, %v2855_v30  ;;  %v2060_v23 = vsel %vm1960_vm11, %v2050_v53, 0.0  ;;  %v4237_v53 = vld [vmem:[#allocation17_spill] sm:$0xff] }
 0x483   : > { %v3933_v21 = vmul.f32 %v2873_v17, %v2857_v42  ;;  %2061 = vadd.xlane.f32.xlu1 %v2060_v23  ;;  %v2113_v49 = vmul.f32 %v3921_v48, %v4237_v53  ;;  %v4238_v17 = vld [vmem:[#allocation18_spill] sm:$0xff] }
 0x484   : > { %v2051_v29 = vmul.f32 %v3930_v22, %v3726_v45  ;;  %v2083_v34 = vmul.f32 %v3930_v22, %v4235_v27  ;;  %v2114_v23 = vmul.f32 %v3926_v60, %v4238_v17 }
 0x485   : > { %v2875_v15 = vpop.eup %2874  ;;  %v2052_v1 = vmul.f32 %v3933_v21, %v3808_v28  ;;  %v2084_v24 = vmul.f32 %v3933_v21, %v3838_v63 }
 0x486   : > { %v2877_v0 = vpop.eup %2876  ;;  %v3939_v3 = vmul.f32 %v2875_v15, %v2859_v10  ;;  %v2063_v39 = vsel %vm1960_vm11, %v2051_v29, 0.0  ;;  %v2095_v25 = vsel %vm1960_vm11, %v2083_v34, 0.0  ;;  %v4239_v29 = vld [vmem:[#allocation20_spill] sm:$0xff]  ;;  %v2147_v34 = vmul.f32 %v3930_v22, %v3674_v43 }
 0x487   : > { %v3942_v35 = vmul.f32 %v2877_v0, %v2861_v2  ;;  %2064 = vadd.xlane.f32.xlu0 %v2063_v39  ;;  %v2066_v30 = vsel %vm1960_vm11, %v2052_v1, 0.0  ;;  %v2115_v15 = vmul.f32 %v3930_v22, %v4239_v29  ;;  %v4240_v1 = vld [vmem:[#allocation19_spill] sm:$0xff] }
 0x488   : > { %2067 = vadd.xlane.f32.xlu1 %v2066_v30  ;;  %v2053_v42 = vmul.f32 %v3939_v3, %v3756_v36  ;;  %v2085_v41 = vmul.f32 %v3939_v3, %v4236_v54  ;;  %v2116_v0 = vmul.f32 %v3933_v21, %v4240_v1  ;;  %v4241_v30 = vld [vmem:[#allocation22_spill] sm:$0xff]  ;;  %v2149_v54 = vmul.f32 %v3939_v3, %v3685_v8 }
 0x489   : > { %v2879_v46 = vpop.eup %2878  ;;  %v2054_v45 = vmul.f32 %v3942_v35, %v3829_v13  ;;  %v4234_v13 = vld [vmem:[#allocation25_spill] sm:$0xff]  ;;  %v2086_v11 = vmul.f32 %v3942_v35, %v3857_v51  ;;  %v2127_v39 = vsel %vm1960_vm11, %v2115_v15, 0.0  ;;  %v2181_v53 = vmul.f32 %v3939_v3, %v3766_v56 }
 0x48a   : > { %v2881_v38 = vpop.eup %2880  ;;  %v3949_v28 = vmul.f32 %v2879_v46, %v2863_v61  ;;  %v2069_v10 = vsel %vm1960_vm11, %v2053_v42, 0.0  ;;  %v2081_v61 = vmul.f32 %v3921_v48, %v4234_v13  ;;  %v2101_v50 = vsel %vm1960_vm11, %v2085_v41, 0.0 }
 0x48b   : > { %v3952_v52 = vmul.f32 %v2881_v38, %v2865_v32  ;;  %2070 = vadd.xlane.f32.xlu0 %v2069_v10  ;;  %v2072_v2 = vsel %vm1960_vm11, %v2054_v45, 0.0  ;;  %v2082_v32 = vmul.f32 %v3926_v60, %v3812_v31  ;;  %v2098_v31 = vsel %vm1960_vm11, %v2084_v24, 0.0  ;;  %v4242_v45 = vld [vmem:[#allocation21_spill] sm:$0xff] }
 0x48c   : > { %2073 = vadd.xlane.f32.xlu1 %v2072_v2  ;;  %v2055_v9 = vmul.f32 %v3949_v28, %v4233_v12  ;;  %v2089_v26 = vsel %vm1960_vm11, %v2081_v61, 0.0  ;;  %v2087_v62 = vmul.f32 %v3949_v28, %v3804_v58  ;;  %v2104_v63 = vsel %vm1960_vm11, %v2086_v11, 0.0  ;;  %v4243_v2 = vld [vmem:[#allocation5_spill] sm:$0xff]  ;;  %v4245_v61 = vld [vmem:[#allocation24_spill] sm:$0xff] }
 0x48d   : > { %v2056_v36 = vmul.f32 %v3952_v52, %v3854_v18  ;;  %v2092_v18 = vsel %vm1960_vm11, %v2082_v32, 0.0  ;;  %v2088_v55 = vmul.f32 %v3952_v52, %v3873_v7  ;;  %v2121_v58 = vsel %vm1960_vm11, %v2113_v49, 0.0 }
 0x48e   : > { %v2075_v47 = vsel %vm1960_vm11, %v2055_v9, 0.0  ;;  %v2107_v40 = vsel %vm1960_vm11, %v2087_v62, 0.0  ;;  %v2124_v7 = vsel %vm1960_vm11, %v2114_v23, 0.0  ;;  %v2117_v42 = vmul.f32 %v3939_v3, %v4241_v30 }
 0x48f   : > { %2076 = vadd.xlane.f32.xlu0 %v2075_v47  ;;  %v2078_v37 = vsel %vm1960_vm11, %v2056_v36, 0.0  ;;  %v2110_v51 = vsel %vm1960_vm11, %v2088_v55, 0.0  ;;  %v2130_v46 = vsel %vm1960_vm11, %v2116_v0, 0.0  ;;  %v2118_v38 = vmul.f32 %v3942_v35, %v4242_v45  ;;  %v4244_v36 = vld [vmem:[#allocation23_spill] sm:$0xff] }
 0x490   : > { %2079 = vadd.xlane.f32.xlu1 %v2078_v37  ;;  %v2133_v10 = vsel %vm1960_vm11, %v2117_v42, 0.0  ;;  %v2119_v12 = vmul.f32 %v3949_v28, %v4243_v2  ;;  %v2120_v47 = vmul.f32 %v3952_v52, %v4244_v36  ;;  %v2145_v37 = vmul.f32 %v3921_v48, %v4245_v61 }
 0x491   : > { %v2136_v9 = vsel %vm1960_vm11, %v2118_v38, 0.0  ;;  %v2148_v24 = vmul.f32 %v3933_v21, %v3659_v16  ;;  %v2150_v41 = vmul.f32 %v3942_v35, %v4226_v33  ;;  %v2165_v43 = vsel %vm1960_vm11, %v2149_v54, 0.0 }
 0x492   : > { %v2139_v13 = vsel %vm1960_vm11, %v2119_v12, 0.0  ;;  %v2142_v32 = vsel %vm1960_vm11, %v2120_v47, 0.0  ;;  %v2153_v27 = vsel %vm1960_vm11, %v2145_v37, 0.0  ;;  %v2152_v11 = vmul.f32 %v3952_v52, %v3878_v14 }
 0x493   : > { %2090 = vadd.xlane.f32.xlu0 %v2089_v26  ;;  %v2146_v26 = vmul.f32 %v3926_v60, %v3655_v4  ;;  %v2162_v4 = vsel %vm1960_vm11, %v2148_v24, 0.0  ;;  %v2168_v16 = vsel %vm1960_vm11, %v2150_v41, 0.0  ;;  %v2179_v55 = vmul.f32 %v3930_v22, %v3759_v6 }
 0x494   : > { %2093 = vadd.xlane.f32.xlu1 %v2092_v18  ;;  %v2174_v33 = vsel %vm1960_vm11, %v2152_v11, 0.0  ;;  %v2197_v6 = vsel %vm1960_vm11, %v2181_v53, 0.0  ;;  %v2183_v22 = vmul.f32 %v3949_v28, %v3888_v19  ;;  %v188_v19 = vld [vmem:[%s4153_s2 + $0x18] sm:$0x7f] }
 0x495   : > { %v2156_v18 = vsel %vm1960_vm11, %v2146_v26, 0.0 }
 0x496   : > { %v2203_v56 = vsel %vm1960_vm11, %v2183_v22, 0.0 }
 0x497   : > { %2096 = vadd.xlane.f32.xlu0 %v2095_v25  ;;  %v2159_v25 = vsel %vm1960_vm11, %v2147_v34, 0.0 }
 0x498   : > { %2099 = vadd.xlane.f32.xlu1 %v2098_v31  ;;  %v2151_v31 = vmul.f32 %v3949_v28, %v3821_v59 }
 0x49a   : > { %v2171_v8 = vsel %vm1960_vm11, %v2151_v31, 0.0 }
 0x49b   : > { %2102 = vadd.xlane.f32.xlu0 %v2101_v50  ;;  %v4246_v50 = vld [vmem:[#allocation27_spill] sm:$0xff] }
 0x49c   : > { %2105 = vadd.xlane.f32.xlu1 %v2104_v63  ;;  %v2177_v62 = vmul.f32 %v3921_v48, %v4246_v50  ;;  %v2178_v63 = vmul.f32 %v3926_v60, %v3748_v5  ;;  %v2191_v48 = vsel %vm1960_vm11, %v2179_v55, 0.0  ;;  %v2182_v60 = vmul.f32 %v3942_v35, %v3795_v44  ;;  %v187_v44 = vld [vmem:[%s4153_s2 + $0x10] sm:$0xff] }
 0x49d   : > { %v2920_v35 = vmov 0.0|0.0  }
 0x49e   : > { %v2185_v59 = vsel %vm1960_vm11, %v2177_v62, 0.0  ;;  %v2188_v14 = vsel %vm1960_vm11, %v2178_v63, 0.0  ;;  %2755 = vmatprep.subr.bf16.mxu1 %v2920_v35  ;;  %2759 = vmatprep.subr.bf16.mxu0 %v2920_v35 }
 0x49f   : > { %2108 = vadd.xlane.f32.xlu0 %v2107_v40  ;;  %v2180_v40 = vmul.f32 %v3933_v21, %v3791_v20  ;;  %v2200_v20 = vsel %vm1960_vm11, %v2182_v60, 0.0  ;;  %v2184_v21 = vmul.f32 %v3952_v52, %v3905_v57  ;;  %v2756_v57 = vpack.c.bf16 %v188_v19, %v187_v44 }
 0x4a0   : > { %2111 = vadd.xlane.f32.xlu1 %v2110_v51 }
 0x4a1   : > { %v2194_v5 = vsel %vm1960_vm11, %v2180_v40, 0.0  ;;  %v2206_v3 = vsel %vm1960_vm11, %v2184_v21, 0.0  ;;  %2758 = vmatpush3.bf16.msk.msra.mxu1 %vm2757_vm14, %v2756_v57 }
 0x4a2   : > { %2765 = vmatprep.subr.bf16.mxu1 %v2920_v35 }
 0x4a3   : > { %2122 = vadd.xlane.f32.xlu0 %v2121_v58 }
 0x4a4   : > { %2125 = vadd.xlane.f32.xlu1 %v2124_v7 }
 0x4a7   : > { %2128 = vadd.xlane.f32.xlu0 %v2127_v39 }
 0x4a8   : > { %2131 = vadd.xlane.f32.xlu1 %v2130_v46 }
 0x4ab   : > { %2134 = vadd.xlane.f32.xlu0 %v2133_v10 }
 0x4ac   : > { %2137 = vadd.xlane.f32.xlu1 %v2136_v9 }
 0x4af   : > { %2140 = vadd.xlane.f32.xlu0 %v2139_v13 }
 0x4b0   : > { %2143 = vadd.xlane.f32.xlu1 %v2142_v32 }
 0x4b3   : > { %2154 = vadd.xlane.f32.xlu0 %v2153_v27 }
 0x4b4   : > { %2157 = vadd.xlane.f32.xlu1 %v2156_v18 }
 0x4b7   : > { %2160 = vadd.xlane.f32.xlu0 %v2159_v25 }
 0x4b8   : > { %2163 = vadd.xlane.f32.xlu1 %v2162_v4 }
 0x4bb   : > { %2166 = vadd.xlane.f32.xlu0 %v2165_v43 }
 0x4bc   : > { %2169 = vadd.xlane.f32.xlu1 %v2168_v16 }
 0x4bf   : > { %2172 = vadd.xlane.f32.xlu0 %v2171_v8 }
 0x4c0   : > { %2175 = vadd.xlane.f32.xlu1 %v2174_v33 }
 0x4c3   : > { %2186 = vadd.xlane.f32.xlu0 %v2185_v59 }
 0x4c4   : > { %2189 = vadd.xlane.f32.xlu1 %v2188_v14 }
 0x4c7   : > { %2192 = vadd.xlane.f32.xlu0 %v2191_v48 }
 0x4c8   : > { %2195 = vadd.xlane.f32.xlu1 %v2194_v5 }
 0x4cb   : > { %2198 = vadd.xlane.f32.xlu0 %v2197_v6  ;;  %v4247_v6 = vld [vmem:[#allocation3_spill] sm:$0xff] }
 0x4cc   : > { %2201 = vadd.xlane.f32.xlu1 %v2200_v20 }
 0x4cf   : > { %2204 = vadd.xlane.f32.xlu0 %v2203_v56 }
 0x4d0   : > { %2207 = vadd.xlane.f32.xlu1 %v2206_v3 }
 0x500   : > { %v2059_v28 = vpop.xlane.xlu0 %2058 }
 0x510   : > { %v2062_v52 = vpop.xlane.xlu1 %2061 }
 0x514   : > { %v2065_v49 = vpop.xlane.xlu0 %2064 }
 0x515   : > { %v2068_v51 = vpop.xlane.xlu1 %2067 }
 0x518   : > { %v2071_v17 = vpop.xlane.xlu0 %2070 }
 0x519   : > { %v2074_v23 = vpop.xlane.xlu1 %2073 }
 0x51c   : > { %v2077_v58 = vpop.xlane.xlu0 %2076 }
 0x51d   : > { %v2080_v29 = vpop.xlane.xlu1 %2079 }
 0x520   : > { %v2091_v15 = vpop.xlane.xlu0 %2090 }
 0x521   : > { %v2094_v7 = vpop.xlane.xlu1 %2093  ;;  %v2210_v54 = vsel %vm2209_vm15, %v2059_v28, %v2091_v15 }
 0x522   : > { %v2211_v41 = vsel %vm2209_vm15, %v2062_v52, %v2094_v7 }
 0x524   : > { %v2097_v1 = vpop.xlane.xlu0 %2096 }
 0x525   : > { %v2100_v0 = vpop.xlane.xlu1 %2099  ;;  %v2212_v4 = vsel %vm2209_vm15, %v2065_v49, %v2097_v1 }
 0x526   : > { %v2213_v43 = vsel %vm2209_vm15, %v2068_v51, %v2100_v0 }
 0x528   : > { %v2103_v39 = vpop.xlane.xlu0 %2102 }
 0x529   : > { %v2106_v30 = vpop.xlane.xlu1 %2105  ;;  %v2214_v3 = vsel %vm2209_vm15, %v2071_v17, %v2103_v39 }
 0x52a   : > { %v2215_v44 = vsel %vm2209_vm15, %v2074_v23, %v2106_v30 }
 0x52c   : > { %v2109_v42 = vpop.xlane.xlu0 %2108 }
 0x52d   : > { %v2112_v46 = vpop.xlane.xlu1 %2111  ;;  %v2216_v19 = vsel %vm2209_vm15, %v2077_v58, %v2109_v42 }
 0x52e   : > { %v2217_v57 = vsel %vm2209_vm15, %v2080_v29, %v2112_v46 }
 0x530   : > { %v2123_v45 = vpop.xlane.xlu0 %2122 }
 0x531   : > { %v2126_v38 = vpop.xlane.xlu1 %2125  ;;  %v2219_v31 = vsel %vm2218_vm1, %v2210_v54, %v2123_v45  ;;  %v4249_v54 = vmov 0.0  }
 0x532   : > { %v2220_v11 = vsel %vm2218_vm1, %v2211_v41, %v2126_v38  ;;  %v190_v41 = vld [vmem:[%s4153_s2 + $0x28] sm:$0xff] }
 0x534   : > { %v2129_v10 = vpop.xlane.xlu0 %2128 }
 0x535   : > { %v2132_v2 = vpop.xlane.xlu1 %2131  ;;  %v2221_v16 = vsel %vm2218_vm1, %v2212_v4, %v2129_v10  ;;  %v189_v4 = vld [vmem:[%s4153_s2 + $0x20] sm:$0xff] }
 0x536   : > { %v2222_v8 = vsel %vm2218_vm1, %v2213_v43, %v2132_v2  ;;  %v191_v43 = vld [vmem:[%s4153_s2 + $0x30] sm:$0xff] }
 0x538   : > { %v2135_v12 = vpop.xlane.xlu0 %2134 }
 0x539   : > { %v2138_v9 = vpop.xlane.xlu1 %2137  ;;  %v2223_v28 = vsel %vm2218_vm1, %v2214_v3, %v2135_v12 }
 0x53a   : > { %v2224_v15 = vsel %vm2218_vm1, %v2215_v44, %v2138_v9  ;;  %v184_v44 = vld [vmem:[%s178_s4] sm:$0xff] }
 0x53c   : > { %v2141_v36 = vpop.xlane.xlu0 %2140 }
 0x53d   : > { %v2144_v47 = vpop.xlane.xlu1 %2143  ;;  %v2225_v52 = vsel %vm2218_vm1, %v2216_v19, %v2141_v36  ;;  %v4248_v36 = vld [vmem:[#allocation4_spill] sm:$0xff] }
 0x53e   : > { %v2226_v7 = vsel %vm2218_vm1, %v2217_v57, %v2144_v47 }
 0x540   : > { %v2155_v13 = vpop.xlane.xlu0 %2154 }
 0x541   : > { %v2158_v61 = vpop.xlane.xlu1 %2157  ;;  %v2228_v50 = vsel %vm2227_vm2, %v2219_v31, %v2155_v13  ;;  %v2760_v31 = vpack.c.bf16 %v190_v41, %v189_v4 }
 0x542   : > { %v2229_v63 = vsel %vm2227_vm2, %v2220_v11, %v2158_v61 }
 0x543   : > { %2761 = vmatpush3.bf16.msra.mxu0 %v2760_v31 }
 0x544   : > { %v2161_v37 = vpop.xlane.xlu0 %2160  ;;  %2762 = vmatprep.subr.bf16.mxu0 %v2920_v35 }
 0x545   : > { %v2164_v32 = vpop.xlane.xlu1 %2163  ;;  %v2230_v62 = vsel %vm2227_vm2, %v2221_v16, %v2161_v37  ;;  %v192_v16 = vld [vmem:[%s4153_s2 + $0x38] sm:$0xff] }
 0x546   : > { %v2231_v59 = vsel %vm2227_vm2, %v2222_v8, %v2164_v32  ;;  %v2763_v11 = vpack.c.bf16 %v192_v16, %v191_v43 }
 0x548   : > { %v2167_v26 = vpop.xlane.xlu0 %2166  ;;  %2764 = vmatpush3.bf16.msra.mxu0 %v2763_v11 }
 0x549   : > { %v2170_v27 = vpop.xlane.xlu1 %2169  ;;  %v2232_v1 = vsel %vm2227_vm2, %v2223_v28, %v2167_v26 }
 0x54a   : > { %v2233_v23 = vsel %vm2227_vm2, %v2224_v15, %v2170_v27 }
 0x54c   : > { %v2173_v34 = vpop.xlane.xlu0 %2172 }
 0x54d   : > { %v2176_v18 = vpop.xlane.xlu1 %2175  ;;  %v2234_v17 = vsel %vm2227_vm2, %v2225_v52, %v2173_v34 }
 0x54e   : > { %v2235_v58 = vsel %vm2227_vm2, %v2226_v7, %v2176_v18 }
 0x550   : > { %v2187_v24 = vpop.xlane.xlu0 %2186 }
 0x551   : > { %v2190_v25 = vpop.xlane.xlu1 %2189  ;;  %v2237_v55 = vsel %vm2236_vm3, %v2228_v50, %v2187_v24 }
 0x552   : > { %v2238_v48 = vsel %vm2236_vm3, %v2229_v63, %v2190_v25 }
 0x554   : > { %v2193_v33 = vpop.xlane.xlu0 %2192 }
 0x555   : > { %v2239_v14 = vsel %vm2236_vm3, %v2230_v62, %v2193_v33  ;;  %v2196_v40 = vpop.xlane.xlu1 %2195  ;;  %v4250_v33 = vld [vmem:[#allocation2_spill] sm:$0xff] }
 0x556   : > { %v2245_v53 = vcombine.low %v2237_v55, %v2239_v14  ;;  %v2240_v5 = vsel %vm2236_vm3, %v2231_v59, %v2196_v40  ;;  %v193_v14 = vld [vmem:[%s4153_s2 + $0x40] sm:$0xff]  ;;  %v194_v40 = vld [vmem:[%s4153_s2 + $0x48] sm:$0xff] }
 0x557   : > { %v2253_v60 = vcombine.low %v2238_v48, %v2240_v5  ;;  %v195_v48 = vld [vmem:[%s4153_s2 + $0x50] sm:$0xff]  ;;  %v196_v5 = vld [vmem:[%s4153_s2 + $0x58] sm:$0xff] }
 0x558   : > { %v2252_v22 = vrot.slane %v2245_v53, %v4247_v6  ;;  %v2199_v20 = vpop.xlane.xlu0 %2198  ;;  %v2766_v53 = vpack.c.bf16 %v194_v40, %v193_v14 }
 0x559   : > { %v2260_v21 = vrot.slane %v2253_v60, %v4247_v6  ;;  %v2202_v56 = vpop.xlane.xlu1 %2201  ;;  %v2241_v29 = vsel %vm2236_vm3, %v2232_v1, %v2199_v20  ;;  %v2769_v60 = vpack.c.bf16 %v196_v5, %v195_v48 }
 0x55a   : > { %v2242_v42 = vsel %vm2236_vm3, %v2233_v23, %v2202_v56 }
 0x55b   : > { %v2277_v49 = vcombine.low %v2252_v22, %v2260_v21  ;;  %v2278_v51 = vcombine.high %v2252_v22, %v2260_v21 }
 0x55c   : > { %v2205_v0 = vpop.xlane.xlu0 %2204 }
 0x55d   : > { %v2243_v39 = vsel %vm2236_vm3, %v2234_v17, %v2205_v0  ;;  %v2208_v30 = vpop.xlane.xlu1 %2207  ;;  %v2285_v47 = vrot.slane %v2277_v49, %v4248_v36  ;;  %v2292_v13 = vrot.slane %v2278_v51, %v4248_v36 }
 0x55e   : > { %v2261_v46 = vcombine.low %v2241_v29, %v2243_v39  ;;  %v2244_v45 = vsel %vm2236_vm3, %v2235_v58, %v2208_v30 }
 0x55f   : > { %v2269_v38 = vcombine.low %v2242_v42, %v2244_v45 }
 0x560   : > { %v2268_v10 = vrot.slane %v2261_v46, %v4247_v6 }
 0x561   : > { %v2276_v2 = vrot.slane %v2269_v38, %v4247_v6  ;;  %v2587_v38 = vmul.f32 -0.5, %v184_v44 }
 0x563   : > { %v2293_v12 = vcombine.low %v2268_v10, %v2276_v2  ;;  %v2294_v9 = vcombine.high %v2268_v10, %v2276_v2  ;;  %v2588_v10 = vmul.f32 %v2587_v38, %v184_v44 }
 0x565   : > { %v2301_v61 = vrot.slane %v2293_v12, %v4248_v36  ;;  %v2308_v37 = vrot.slane %v2294_v9, %v4248_v36 }
 0x567   : > { %v2311_v32 = vcombine.low %v2292_v13, %v2308_v37  ;;  %v2310_v26 = vcombine.high %v2285_v47, %v2301_v61  ;;  %v2309_v27 = vcombine.low %v2285_v47, %v2301_v61 }
 0x569   : > { %2317 = vrot.lane.b32.xlu1 %v2311_v32, %s2922_s5  ;;  %2313 = vrot.lane.b32.xlu0 %v2310_v26, %s2923_s6  ;;  %s2928_s5 = smov 79   ;;  %s2929_s6 = smov 126  }
 0x5db   : > { %v2318_v34 = vpop.permute.xlu1 %2317  ;;  %v2314_v18 = vpop.permute.xlu0 %2313 }
 0x5dc   : > { %v2321_v24 = vsel %vm2320_vm4, %v2309_v27, %v2314_v18 }
 0x5dd   : > { %v2323_v25 = vsel %vm2322_vm5, %v2321_v24, %v2318_v34 }
 0x5de   : > { %2731 = vmatmul.mubr.msk.f32.vlgmr.msra.gmra.mrb[0].mxu1 %vm2324_vm6, %v2323_v25 }
 0x5df   : > { %2752 = vmatprep.mubr.msk.f32.mxu1 %vm2899_vm0, %v4249_v54  ;;  %vm2411_vm0 = vcmask 261120   ;;  %2767 = vmatpush3.bf16.msra.mxu1 %v2766_v53 }
 0x5e0   : > { %2768 = vmatprep.subr.bf16.mxu1 %v2920_v35 }
 0x5e3   : > { %2770 = vmatpush3.bf16.msra.mxu1 %v2769_v60 }
 0x6b1   : > { %v2398_v8 = vpop.f32.mrb[0].mxu1 }
 0x6b2   : > { %2403 = vrot.lane.b32.xlu1 %v2398_v8, %s2924_s17  ;;  %v2732_v50 = vpop.f32.mrb[1].mxu1 }
 0x724   : > { %v2404_v62 = vpop.permute.xlu1 %2403 }
 0x725   : > { %v2406_v63 = vadd.f32 %v2404_v62, %v4250_v33 }
 0x727   : > { %v2407_v59 = vmax.f32 %v2406_v63, 0.0 }
 0x729   : > { %2409 = vrot.lane.b32.xlu0 %v2407_v59, %s2925_s18 }
 0x79b   : > { %v2410_v55 = vpop.permute.xlu0 %2409 }
 0x79c   : > { %2742 = vmatmul.mubr.msk.f32.vlgmr.msra.gmra.mrb[2].mxu0 %vm2411_vm0, %v2410_v55 }
 0x86f   : > { %v2480_v6 = vpop.f32.mrb[2].mxu0 }
 0x870   : > { %2485 = vrot.lane.b32.xlu1 %v2480_v6, %s2926_s27  ;;  %v2743_v22 = vpop.f32.mrb[3].mxu0 }
 0x8e2   : > { %v2486_v20 = vpop.permute.xlu1 %2485 }
 0x8e3   : > { %v2488_v21 = vadd.f32 %v2486_v20, %v2406_v63 }
 0x8e5   : > { %v2489_v56 = vmax.f32 %v2488_v21, 0.0 }
 0x8e7   : > { %2491 = vrot.lane.b32.xlu0 %v2489_v56, %s2927_s28 }
 0x8eb   : > { %2577 = vrot.lane.b32.xlu0 %v184_v44, %s2927_s28 }
 0x959   : > { %v2492_v3 = vpop.permute.xlu0 %2491 }
 0x95a   : > { %2753 = vmatmul.mubr.msk.f32.vlgmr.msra.gmra.mrb[2].mxu1 %vm2411_vm0, %v2492_v3 }
 0x95d   : > { %v2578_v1 = vpop.permute.xlu0 %2577 }
 0xa2d   : > { %v2561_v35 = vpop.f32.mrb[2].mxu1 }
 0xa2e   : > { %2566 = vrot.lane.b32.xlu1 %v2561_v35, %s2928_s5  ;;  %v2754_v19 = vpop.f32.mrb[3].mxu1 }
 0xaa0   : > { %v2567_v57 = vpop.permute.xlu1 %2566 }
 0xaa1   : > { %v2569_v28 = vadd.f32 %v2567_v57, %v2406_v63 }
 0xaa3   : > { %2882 = vtanh.f32 %v2569_v28 }
 0xaad   : > { %v2883_v52 = vpop.eup %2882 }
 0xaae   : > { %v2571_v49 = vadd.f32 1.0, %v2883_v52 }
 0xab0   : > { %v2572_v51 = vmul.f32 11.0, %v2571_v49 }
 0xab2   : > { %v2573_v15 = vadd.f32 -20.0, %v2572_v51 }
 0xab4   : > { %2590 = vrot.lane.b32.xlu0 %v2573_v15, %s2926_s27  ;;  %v2574_v7 = vmul.f32 1.442695, %v2573_v15 }
 0xab6   : > { %2884 = vpow2.f32 %v2574_v7 }
 0xac0   : > { %v2885_v17 = vpop.eup %2884 }
 0xac1   : > { %v2580_v0 = vmul.f32 %v2885_v17, %v2578_v1 }
 0xac3   : > { %2582 = vrot.lane.b32.xlu1 %v2580_v0, %s2929_s6 }
 0xb26   : > { %v2591_v2 = vpop.permute.xlu0 %2590 }
 0xb27   : > { %v2593_v12 = vsub.f32 %v2588_v10, %v2591_v2 }
 0xb29   : > { %v2703_v9 = vadd.f32 -0.9189385, %v2593_v12 }
 0xb35   : > { %v2583_v23 = vpop.permute.xlu1 %2582 }
 0xb36   : > { %v2585_v58 = vadd.f32 %v2883_v52, %v2583_v23 }
 0xb38   : > { %2886 = vtanh.f32 %v2585_v58 }
 0xb42   : > { %v2887_v29 = vpop.eup %2886 }
 0xb43   : > { %v2595_v39 = vmul.f32 %v2887_v29, %v2887_v29 }
 0xb45   : > { %v2596_v30 = vsub.f32 1.0, %v2595_v39 }
 0xb47   : > { %v2597_v42 = vadd.f32 1e-07, %v2596_v30 }
 0xb49   : > { %2888 = vlog2.f32 %v2597_v42 }
 0xb53   : > { %v2889_v46 = vpop.eup %2888 }
 0xb54   : > { %v2599_v45 = vmul.f32 0.6931472, %v2889_v46 }
 0xb56   : > { %2601 = vrot.lane.b32.xlu1 %v2599_v45, %s2930_s7 }
 0xb5a   : > { %2609 = vrot.lane.b32.xlu1 %v2887_v29, %s2930_s7 }
 0xbc8   : > { %v2602_v36 = vpop.permute.xlu1 %2601 }
 0xbc9   : > { %v2604_v47 = vsub.f32 %v2703_v9, %v2602_v36 }
 0xbcb   : > { %v2605_v13 = vsel %vm2218_vm1, %v2604_v47, 0.0 }
 0xbcc   : > { %2606 = vadd.xlane.f32.xlu0 %v2605_v13  ;;  %v2610_v61 = vpop.permute.xlu1 %2609 }
 0xc59   : > { %v2607_v37 = vpop.xlane.xlu0 %2606 }
 0xc5a   : > { %v2612_v32 = vsel %vm2218_vm1, %v2610_v61, %v2607_v37 }
 0xc5b   : > { %2613 = vst.msk [vmem:[%s182_s10] sm:$0xff] %vm2227_vm2, %v2612_v32 }
 0xc5c PF: > { %s13_s12 = sadd.s32 1, %s2896_s12  }
 0xc5d   : > { %p10_p4 = scmp.ge.s32.totalorder %s13_s12, 4  }
 0xc5f   :  { %12 = sbr.rel (!%p10_p4) target bundleno = 1 (0x1), region = 65 }

</bundles_post_ra>
